<compile_context>
chip_gen: v5e
topology: v5e:2x2
jax: 0.10.0
libtpu: 0.0.40
codegen_flags: <defaults>
</compile_context>

<pallas_src>
import functools

import jax
import jax.numpy as jnp
import numpy as np
from jax.experimental import pallas as pl
from jax.experimental.pallas import tpu as pltpu


def _convlstm_kernel(HID, b_blk, HW, act_dtype,
                     pm_ref, w_main_ref, b_main_ref,
                     pr_ref, w_res_ref,
                     w_se1_ref, b_se1_ref, w_se2_ref, b_se2_ref,
                     c_cur_ref,
                     hc_ref):
    C4 = 4 * HID
    M = b_blk * HW

    pm = pm_ref[...]                                        # (b_blk, HW, Kpad)

    # ---- SE squeeze from the patch row-mean (pool-before-GEMM: mean is linear
    #      so this equals mean(conv); it is independent of the big GEMM below
    #      and overlaps with it).
    gp_patch = jnp.mean(pm.astype(jnp.float32), axis=1).astype(pm.dtype)
    gp = (jnp.dot(gp_patch, w_main_ref[...],
                  preferred_element_type=jnp.float32) + b_main_ref[...])
    se_h = jnp.maximum(
        jnp.dot(gp, w_se1_ref[...], preferred_element_type=jnp.float32)
        + b_se1_ref[...], 0.0)
    se = jax.nn.sigmoid(
        jnp.dot(se_h, w_se2_ref[...], preferred_element_type=jnp.float32)
        + b_se2_ref[...])                                   # (b_blk, C4)

    # ---- main conv (Conv2d over [x, h] concat) as one batched im2col GEMM ----
    conv = (jnp.dot(pm.reshape(M, -1), w_main_ref[...],
                    preferred_element_type=jnp.float32) + b_main_ref[...])

    # ---- residual branch: block-diagonal GEMM (res_rate*res_para folded in) --
    res = jnp.dot(pr_ref[...].reshape(M, -1), w_res_ref[...],
                  preferred_element_type=jnp.float32)

    if b_blk == 1:
        cc = conv * se + res                                # se broadcasts (1,C4)
    else:
        se_rows = jnp.broadcast_to(se[:, None, :], (b_blk, HW, C4)).reshape(M, C4)
        cc = conv * se_rows + res

    # ---- LSTM gates: activations over the full 4*HID lanes, sliced after.
    #      act_dtype is bf16 on chips with a bf16 EUP (v6e/v7x), f32 otherwise.
    #      (At HID=32 the gate bands are 32-lane sub-vreg slices; slicing before
    #      the activations only pays off when HID is a multiple of 128.)
    cc_a = cc.astype(act_dtype)
    sg = jax.nn.sigmoid(cc_a).astype(jnp.float32)
    th = jnp.tanh(cc_a).astype(jnp.float32)
    i_g = sg[:, 0 * HID:1 * HID]
    f_g = sg[:, 1 * HID:2 * HID]
    o_g = sg[:, 2 * HID:3 * HID]
    g_g = th[:, 3 * HID:4 * HID]

    c_cur = c_cur_ref[...].reshape(M, HID)
    c_next = f_g * c_cur + i_g * g_g                        # f32 state math
    h_next = o_g * jnp.tanh(c_next.astype(act_dtype)).astype(jnp.float32)

    hc = jnp.concatenate([h_next, c_next], axis=-1)         # (M, 2*HID)
    hc_ref[...] = hc.reshape(b_blk, HW, 2 * HID)


def _im2col_3x3(x_nhwc):
    """(B,H,W,C) -> (B,H,W,9*C) patches, flattened in (dy, dx, c) order,
    with zero padding of 1 on each spatial side."""
    B, H, W, C = x_nhwc.shape
    xp = jnp.pad(x_nhwc, ((0, 0), (1, 1), (1, 1), (0, 0)))
    cols = [xp[:, dy:dy + H, dx:dx + W, :] for dy in range(3) for dx in range(3)]
    return jnp.concatenate(cols, axis=-1)


def _gate_act_dtype():
    """bf16 gate activations only on chips with a bf16 EUP (v6e / v7x)."""
    try:
        kind = jax.devices()[0].device_kind.lower()
    except Exception:
        return jnp.float32
    return jnp.bfloat16 if ('v6' in kind or 'v7' in kind) else jnp.float32


def _pick_batch_block(B, per_batch_bytes, budget_bytes=8 * 1024 * 1024):
    """Largest divisor of B that (a) keeps >= 2 grid steps when B >= 2 so a
    2-TC chip (v7x) can shard the 'parallel' axis, and (b) fits a conservative
    per-step VMEM budget (double-buffered inputs + f32 intermediates)."""
    best = 1
    for cand in range(1, B + 1):
        if B % cand != 0:
            continue
        if B >= 2 and (B // cand) < 2:
            continue
        if cand * per_batch_bytes > budget_bytes:
            continue
        best = cand
    return best


def conv_lstm_cell_forward(params, x, h_cur, c_cur, *, hidden_dim, res_rate,
                           server_num=4, compute_dtype=jnp.bfloat16,
                           act_dtype=None, batch_block=None):
    """x, h_cur, c_cur are NCHW (PyTorch convention). Returns (h_next, c_next) NCHW."""
    B, Cin, H, W = x.shape
    assert H == 2 * server_num, "module semantics require H == 2*server_num"
    HID = hidden_dim
    C4 = 4 * HID
    Cc = Cin + HID
    HW = H * W
    Kmain = 9 * Cc
    Kpad = ((Kmain + 127) // 128) * 128      # lane-aligned K for the main GEMM
    Kres = server_num * 9 * Cin
    Cr = params['w_se1'].shape[0]            # 4*HID // reduce

    if act_dtype is None:
        act_dtype = _gate_act_dtype()

    x_nhwc = jnp.transpose(x, (0, 2, 3, 1))
    h_nhwc = jnp.transpose(h_cur, (0, 2, 3, 1))
    c_flat = jnp.transpose(c_cur, (0, 2, 3, 1)).reshape(B, HW, HID)

    # im2col for the main conv over concat([x, h], channel), zero-padded to Kpad.
    # TODO(synk): at production H*W, build these patches in-kernel from an
    # (H+2)-row window DMA instead of materializing the 9x expansion in HBM.
    combined = jnp.concatenate([x_nhwc, h_nhwc], axis=-1)
    patches_main = _im2col_3x3(combined).reshape(B, HW, Kmain)
    patches_main = jnp.pad(patches_main, ((0, 0), (0, 0), (0, Kpad - Kmain)))
    patches_main = patches_main.astype(compute_dtype)

    # block-diagonal residual patches: rows of height-chunk s (each chunk
    # zero-padded independently, exactly like Conv2d(padding=1) on the split
    # tensor) carry their 9*Cin patch only in column band s.
    chunk_rows = []
    for s in range(server_num):
        p = _im2col_3x3(x_nhwc[:, 2 * s:2 * s + 2, :, :])     # (B,2,W,9*Cin)
        left = jnp.zeros((B, 2, W, s * 9 * Cin), x.dtype)
        right = jnp.zeros((B, 2, W, (server_num - 1 - s) * 9 * Cin), x.dtype)
        chunk_rows.append(jnp.concatenate([left, p, right], axis=-1))
    patches_res = (jnp.concatenate(chunk_rows, axis=1)
                   .reshape(B, HW, Kres).astype(compute_dtype))

    # weights -> GEMM layout: (kh, kw, cin, cout) flattened -> (K, cout)
    w_main = jnp.transpose(params['w_conv'], (2, 3, 1, 0)).reshape(Kmain, C4)
    w_main = jnp.pad(w_main, ((0, Kpad - Kmain), (0, 0))).astype(compute_dtype)
    b_main = params['b_conv'].reshape(1, C4).astype(jnp.float32)
    w_res_blocks = []
    for s in range(server_num):
        w_s = jnp.transpose(params['w_res'][s], (2, 3, 1, 0)).reshape(9 * Cin, C4)
        # fold res_rate * res_para[s] into the stacked residual weights
        w_res_blocks.append((res_rate * params['res_para'][s]) * w_s)
    w_res_bd = jnp.concatenate(w_res_blocks, axis=0).astype(compute_dtype)
    w_se1 = params['w_se1'].T.astype(jnp.float32)             # (C4, Cr)
    b_se1 = params['b_se1'].reshape(1, Cr).astype(jnp.float32)
    w_se2 = params['w_se2'].T.astype(jnp.float32)             # (Cr, C4)
    b_se2 = params['b_se2'].reshape(1, C4).astype(jnp.float32)

    # batch-block size: fatter steps amortize the ~0.35us per-step overhead and
    # fill the MXU M dim; keep >=2 parallel steps (v7x TCs) and stay in budget.
    itemsize = jnp.dtype(compute_dtype).itemsize
    per_batch = (2 * HW * (Kpad + Kres) * itemsize            # patches (dbl-buf)
                 + 2 * HW * (HID + 2 * HID) * 4               # c_cur + hc out
                 + 8 * HW * C4 * 4)                           # f32 intermediates
    b_blk = _pick_batch_block(B, per_batch) if batch_block is None else batch_block
    assert B % b_blk == 0
    G = B // b_blk

    kernel = functools.partial(_convlstm_kernel, HID, b_blk, HW, act_dtype)

    grid_spec = pltpu.PrefetchScalarGridSpec(
        num_scalar_prefetch=0,
        grid=(G,),
        in_specs=[
            pl.BlockSpec((b_blk, HW, Kpad), lambda g: (g, 0, 0)),   # patches_main
            pl.BlockSpec((Kpad, C4), lambda g: (0, 0)),             # w_main
            pl.BlockSpec((1, C4), lambda g: (0, 0)),                # b_main
            pl.BlockSpec((b_blk, HW, Kres), lambda g: (g, 0, 0)),   # patches_res
            pl.BlockSpec((Kres, C4), lambda g: (0, 0)),             # w_res_bd
            pl.BlockSpec((C4, Cr), lambda g: (0, 0)),               # w_se1
            pl.BlockSpec((1, Cr), lambda g: (0, 0)),                # b_se1
            pl.BlockSpec((Cr, C4), lambda g: (0, 0)),               # w_se2
            pl.BlockSpec((1, C4), lambda g: (0, 0)),                # b_se2
            pl.BlockSpec((b_blk, HW, HID), lambda g: (g, 0, 0)),    # c_cur
        ],
        out_specs=pl.BlockSpec((b_blk, HW, 2 * HID), lambda g: (g, 0, 0)),
    )

    hc = pl.pallas_call(
        kernel,
        out_shape=jax.ShapeDtypeStruct((B, HW, 2 * HID), jnp.float32),
        grid_spec=grid_spec,
        compiler_params=pltpu.CompilerParams(
            dimension_semantics=("parallel",),
            vmem_limit_bytes=32 * 1024 * 1024),
    )(patches_main, w_main, b_main, patches_res, w_res_bd,
      w_se1, b_se1, w_se2, b_se2, c_flat)

    h_next = jnp.transpose(hc[:, :, :HID].reshape(B, H, W, HID), (0, 3, 1, 2))
    c_next = jnp.transpose(hc[:, :, HID:].reshape(B, H, W, HID), (0, 3, 1, 2))
    return h_next, c_next


def reference_forward(params, x, h, c, *, hidden_dim, res_rate, server_num):
    """Pure-JAX f32 reference of the PyTorch forward, NCHW."""
    dn = ('NCHW', 'OIHW', 'NCHW')
    prec = jax.lax.Precision.HIGHEST
    HID = hidden_dim
    combined = jnp.concatenate([x, h], axis=1)
    conv = jax.lax.conv_general_dilated(combined, params['w_conv'], (1, 1),
                                        'SAME', dimension_numbers=dn,
                                        precision=prec)
    conv = conv + params['b_conv'][None, :, None, None]
    res_parts = []
    for s in range(server_num):
        chunk = x[:, :, 2 * s:2 * s + 2, :]
        r = jax.lax.conv_general_dilated(chunk, params['w_res'][s], (1, 1),
                                         'SAME', dimension_numbers=dn,
                                         precision=prec)
        res_parts.append(params['res_para'][s] * r)
    res_comb = jnp.concatenate(res_parts, axis=2)
    gp = conv.mean(axis=(2, 3))
    se_h = jnp.maximum(gp @ params['w_se1'].T + params['b_se1'], 0.0)
    se = jax.nn.sigmoid(se_h @ params['w_se2'].T + params['b_se2'])
    conv_se = conv * se[:, :, None, None]
    cc = conv_se + res_rate * res_comb
    i = jax.nn.sigmoid(cc[:, 0:HID])
    f = jax.nn.sigmoid(cc[:, HID:2 * HID])
    o = jax.nn.sigmoid(cc[:, 2 * HID:3 * HID])
    g = jnp.tanh(cc[:, 3 * HID:4 * HID])
    c_next = f * c + i * g
    h_next = o * jnp.tanh(c_next)
    return h_next, c_next


if __name__ == "__main__":
    # small shapes consistent with the module: server_num=4 => H must be 8
    B, Cin, H, W = 2, 4, 8, 16
    HID = 32
    SERVER = 4
    REDUCE = 16
    RES_RATE = 0.1
    C4 = 4 * HID
    Cc = Cin + HID

    key = jax.random.PRNGKey(0)
    keys = jax.random.split(key, 12)
    params = {
        # nn.Conv2d(Cin+HID -> 4*HID, 3x3, bias=True): weight OIHW, bias (O,)
        'w_conv': 0.1 * jax.random.normal(keys[0], (C4, Cc, 3, 3), jnp.float32),
        'b_conv': 0.1 * jax.random.normal(keys[1], (C4,), jnp.float32),
        # server_num Conv2d(Cin -> 4*HID, 3x3, bias=False)
        'w_res': 0.1 * jax.random.normal(keys[2], (SERVER, C4, Cin, 3, 3),
                                         jnp.float32),
        # res_para: server_num scalar parameters
        'res_para': jax.random.normal(keys[3], (SERVER,), jnp.float32),
        # SE MLP: Linear(4H -> 4H//reduce), Linear(4H//reduce -> 4H)
        'w_se1': 0.1 * jax.random.normal(keys[4], (C4 // REDUCE, C4), jnp.float32),
        'b_se1': 0.1 * jax.random.normal(keys[5], (C4 // REDUCE,), jnp.float32),
        'w_se2': 0.1 * jax.random.normal(keys[6], (C4, C4 // REDUCE), jnp.float32),
        'b_se2': 0.1 * jax.random.normal(keys[7], (C4,), jnp.float32),
    }

    x = jax.random.normal(keys[8], (B, Cin, H, W), jnp.float32)
    h0 = 0.5 * jax.random.normal(keys[9], (B, HID, H, W), jnp.float32)
    c0 = 0.5 * jax.random.normal(keys[10], (B, HID, H, W), jnp.float32)

    # ---- primary (performance) path: bf16 MXU operands, device-chosen gates --
    h_next, c_next = conv_lstm_cell_forward(
        params, x, h0, c0, hidden_dim=HID, res_rate=RES_RATE, server_num=SERVER)
    jax.block_until_ready((h_next, c_next))

    h_ref, c_ref = reference_forward(
        params, x, h0, c0, hidden_dim=HID, res_rate=RES_RATE, server_num=SERVER)
    # tolerance accounts for bf16 MXU inputs and (on v6e/v7x) bf16 activations;
    # NOTE: in a recurrent rollout the bf16 conv error compounds through c_next.
    np.testing.assert_allclose(np.asarray(h_next), np.asarray(h_ref),
                               rtol=5e-2, atol=5e-2)
    np.testing.assert_allclose(np.asarray(c_next), np.asarray(c_ref),
                               rtol=5e-2, atol=5e-2)

    # ---- strict logic check (per review): full-f32 kernel path, tight tol ----
    # separates indexing/layout bugs from bf16 rounding; tolerance leaves
    # headroom for pool-before-GEMM reassociation and MXU f32 pass decomposition.
    h32, c32 = conv_lstm_cell_forward(
        params, x, h0, c0, hidden_dim=HID, res_rate=RES_RATE, server_num=SERVER,
        compute_dtype=jnp.float32, act_dtype=jnp.float32)
    jax.block_until_ready((h32, c32))
    np.testing.assert_allclose(np.asarray(h32), np.asarray(h_ref),
                               rtol=2e-3, atol=2e-3)
    np.testing.assert_allclose(np.asarray(c32), np.asarray(c_ref),
                               rtol=2e-3, atol=2e-3)

    print("KERNEL_OK")
</pallas_src>

<mosaic_0001>
module attributes {stable_mosaic.version = 11 : i64} {
  func.func @_convlstm_kernel(%arg0: i32, %arg1: memref<1x128x384xbf16, #tpu.memory_space<vmem>>, %arg2: memref<384x128xbf16, #tpu.memory_space<vmem>>, %arg3: memref<1x128xf32, #tpu.memory_space<vmem>>, %arg4: memref<1x128x144xbf16, #tpu.memory_space<vmem>>, %arg5: memref<144x128xbf16, #tpu.memory_space<vmem>>, %arg6: memref<128x8xf32, #tpu.memory_space<vmem>>, %arg7: memref<1x8xf32, #tpu.memory_space<vmem>>, %arg8: memref<8x128xf32, #tpu.memory_space<vmem>>, %arg9: memref<1x128xf32, #tpu.memory_space<vmem>>, %arg10: memref<1x128x32xf32, #tpu.memory_space<vmem>>, %arg11: memref<1x128x64xf32, #tpu.memory_space<vmem>>) attributes {dimension_semantics = [#tpu.dimension_semantics<parallel>], iteration_bounds = array<i64: 2>, scalar_prefetch = 0 : i64, scratch_operands = 0 : i64, tpu.core_type = #tpu.core_type<tc>, window_params = [{transform_indices = @transform_0, window_bounds = array<i64: 1, 128, 384>}, {pipeline_mode = #tpu.pipeline_mode<synchronous>, transform_indices = @transform_1, window_bounds = array<i64: 384, 128>}, {pipeline_mode = #tpu.pipeline_mode<synchronous>, transform_indices = @transform_2, window_bounds = array<i64: 1, 128>}, {transform_indices = @transform_3, window_bounds = array<i64: 1, 128, 144>}, {pipeline_mode = #tpu.pipeline_mode<synchronous>, transform_indices = @transform_4, window_bounds = array<i64: 144, 128>}, {pipeline_mode = #tpu.pipeline_mode<synchronous>, transform_indices = @transform_5, window_bounds = array<i64: 128, 8>}, {pipeline_mode = #tpu.pipeline_mode<synchronous>, transform_indices = @transform_6, window_bounds = array<i64: 1, 8>}, {pipeline_mode = #tpu.pipeline_mode<synchronous>, transform_indices = @transform_7, window_bounds = array<i64: 8, 128>}, {pipeline_mode = #tpu.pipeline_mode<synchronous>, transform_indices = @transform_8, window_bounds = array<i64: 1, 128>}, {transform_indices = @transform_9, window_bounds = array<i64: 1, 128, 32>}, {transform_indices = @transform_10, window_bounds = array<i64: 1, 128, 64>}]} {
    %c0 = arith.constant 0 : index
    %c0_0 = arith.constant 0 : index
    %c0_1 = arith.constant 0 : index
    %0 = vector.load %arg1[%c0, %c0_0, %c0_1] : memref<1x128x384xbf16, #tpu.memory_space<vmem>>, vector<1x128x384xbf16>
    %1 = arith.extf %0 : vector<1x128x384xbf16> to vector<1x128x384xf32>
    %cst = arith.constant dense<0.000000e+00> : vector<1x384xf32>
    %2 = vector.multi_reduction <add>, %1, %cst [1] : vector<1x128x384xf32> to vector<1x384xf32>
    %cst_2 = arith.constant 1.280000e+02 : f32
    %3 = vector.broadcast %cst_2 : f32 to vector<1x384xf32>
    %4 = arith.divf %2, %3 : vector<1x384xf32>
    %5 = arith.truncf %4 : vector<1x384xf32> to vector<1x384xbf16>
    %c0_3 = arith.constant 0 : index
    %c0_4 = arith.constant 0 : index
    %6 = vector.load %arg2[%c0_3, %c0_4] : memref<384x128xbf16, #tpu.memory_space<vmem>>, vector<384x128xbf16>
    %cst_5 = arith.constant dense<0.000000e+00> : vector<1x128xf32>
    %7 = tpu.matmul %5, %6, %cst_5 {dimension_numbers = #tpu.dot_dimension_numbers<[1], [0], [0], [1], [0, 0, 1, 1], [], []>} : vector<1x384xbf16>, vector<384x128xbf16>, vector<1x128xf32> -> vector<1x128xf32>
    %c0_6 = arith.constant 0 : index
    %c0_7 = arith.constant 0 : index
    %8 = vector.load %arg3[%c0_6, %c0_7] : memref<1x128xf32, #tpu.memory_space<vmem>>, vector<1x128xf32>
    %9 = arith.addf %7, %8 : vector<1x128xf32>
    %c0_8 = arith.constant 0 : index
    %c0_9 = arith.constant 0 : index
    %10 = vector.load %arg6[%c0_8, %c0_9] : memref<128x8xf32, #tpu.memory_space<vmem>>, vector<128x8xf32>
    %cst_10 = arith.constant dense<0.000000e+00> : vector<1x8xf32>
    %11 = tpu.matmul %9, %10, %cst_10 {dimension_numbers = #tpu.dot_dimension_numbers<[1], [0], [0], [1], [0, 0, 1, 1], [], []>} : vector<1x128xf32>, vector<128x8xf32>, vector<1x8xf32> -> vector<1x8xf32>
    %c0_11 = arith.constant 0 : index
    %c0_12 = arith.constant 0 : index
    %12 = vector.load %arg7[%c0_11, %c0_12] : memref<1x8xf32, #tpu.memory_space<vmem>>, vector<1x8xf32>
    %13 = arith.addf %11, %12 : vector<1x8xf32>
    %cst_13 = arith.constant 0.000000e+00 : f32
    %14 = vector.broadcast %cst_13 : f32 to vector<1x8xf32>
    %15 = arith.maximumf %13, %14 : vector<1x8xf32>
    %c0_14 = arith.constant 0 : index
    %c0_15 = arith.constant 0 : index
    %16 = vector.load %arg8[%c0_14, %c0_15] : memref<8x128xf32, #tpu.memory_space<vmem>>, vector<8x128xf32>
    %cst_16 = arith.constant dense<0.000000e+00> : vector<1x128xf32>
    %17 = tpu.matmul %15, %16, %cst_16 {dimension_numbers = #tpu.dot_dimension_numbers<[1], [0], [0], [1], [0, 0, 1, 1], [], []>} : vector<1x8xf32>, vector<8x128xf32>, vector<1x128xf32> -> vector<1x128xf32>
    %c0_17 = arith.constant 0 : index
    %c0_18 = arith.constant 0 : index
    %18 = vector.load %arg9[%c0_17, %c0_18] : memref<1x128xf32, #tpu.memory_space<vmem>>, vector<1x128xf32>
    %19 = arith.addf %17, %18 : vector<1x128xf32>
    %20 = arith.negf %19 : vector<1x128xf32>
    %21 = math.exp %20 : vector<1x128xf32>
    %cst_19 = arith.constant 1.000000e+00 : f32
    %22 = vector.broadcast %cst_19 : f32 to vector<1x128xf32>
    %23 = arith.addf %22, %21 : vector<1x128xf32>
    %24 = arith.divf %22, %23 : vector<1x128xf32>
    %25 = vector.shape_cast %0 : vector<1x128x384xbf16> to vector<128x384xbf16>
    %c0_20 = arith.constant 0 : index
    %c0_21 = arith.constant 0 : index
    %26 = vector.load %arg2[%c0_20, %c0_21] : memref<384x128xbf16, #tpu.memory_space<vmem>>, vector<384x128xbf16>
    %cst_22 = arith.constant dense<0.000000e+00> : vector<128x128xf32>
    %27 = tpu.matmul %25, %26, %cst_22 {dimension_numbers = #tpu.dot_dimension_numbers<[1], [0], [0], [1], [0, 0, 1, 1], [], []>} : vector<128x384xbf16>, vector<384x128xbf16>, vector<128x128xf32> -> vector<128x128xf32>
    %c0_23 = arith.constant 0 : index
    %c0_24 = arith.constant 0 : index
    %28 = vector.load %arg3[%c0_23, %c0_24] : memref<1x128xf32, #tpu.memory_space<vmem>>, vector<1x128xf32>
    %29 = vector.broadcast %28 : vector<1x128xf32> to vector<128x128xf32>
    %30 = arith.addf %27, %29 : vector<128x128xf32>
    %c0_25 = arith.constant 0 : index
    %c0_26 = arith.constant 0 : index
    %c0_27 = arith.constant 0 : index
    %31 = vector.load %arg4[%c0_25, %c0_26, %c0_27] : memref<1x128x144xbf16, #tpu.memory_space<vmem>>, vector<1x128x144xbf16>
    %32 = vector.shape_cast %31 : vector<1x128x144xbf16> to vector<128x144xbf16>
    %c0_28 = arith.constant 0 : index
    %c0_29 = arith.constant 0 : index
    %33 = vector.load %arg5[%c0_28, %c0_29] : memref<144x128xbf16, #tpu.memory_space<vmem>>, vector<144x128xbf16>
    %cst_30 = arith.constant dense<0.000000e+00> : vector<128x128xf32>
    %34 = tpu.matmul %32, %33, %cst_30 {dimension_numbers = #tpu.dot_dimension_numbers<[1], [0], [0], [1], [0, 0, 1, 1], [], []>} : vector<128x144xbf16>, vector<144x128xbf16>, vector<128x128xf32> -> vector<128x128xf32>
    %35 = vector.broadcast %24 : vector<1x128xf32> to vector<128x128xf32>
    %36 = arith.mulf %30, %35 : vector<128x128xf32>
    %37 = arith.addf %36, %34 : vector<128x128xf32>
    %38 = arith.negf %37 : vector<128x128xf32>
    %39 = math.exp %38 : vector<128x128xf32>
    %cst_31 = arith.constant 1.000000e+00 : f32
    %40 = vector.broadcast %cst_31 : f32 to vector<128x128xf32>
    %41 = arith.addf %40, %39 : vector<128x128xf32>
    %42 = arith.divf %40, %41 : vector<128x128xf32>
    %43 = math.tanh %37 : vector<128x128xf32>
    %44 = vector.extract_strided_slice %42 {offsets = [0, 0], sizes = [128, 32], strides = [1, 1]} : vector<128x128xf32> to vector<128x32xf32>
    %45 = vector.extract_strided_slice %42 {offsets = [0, 32], sizes = [128, 32], strides = [1, 1]} : vector<128x128xf32> to vector<128x32xf32>
    %46 = vector.extract_strided_slice %42 {offsets = [0, 64], sizes = [128, 32], strides = [1, 1]} : vector<128x128xf32> to vector<128x32xf32>
    %47 = vector.extract_strided_slice %43 {offsets = [0, 96], sizes = [128, 32], strides = [1, 1]} : vector<128x128xf32> to vector<128x32xf32>
    %c0_32 = arith.constant 0 : index
    %c0_33 = arith.constant 0 : index
    %c0_34 = arith.constant 0 : index
    %48 = vector.load %arg10[%c0_32, %c0_33, %c0_34] : memref<1x128x32xf32, #tpu.memory_space<vmem>>, vector<1x128x32xf32>
    %49 = vector.shape_cast %48 : vector<1x128x32xf32> to vector<128x32xf32>
    %50 = arith.mulf %45, %49 : vector<128x32xf32>
    %51 = arith.mulf %44, %47 : vector<128x32xf32>
    %52 = arith.addf %50, %51 : vector<128x32xf32>
    %53 = math.tanh %52 : vector<128x32xf32>
    %54 = arith.mulf %46, %53 : vector<128x32xf32>
    %55 = tpu.concatenate %54, %52 in 1 : vector<128x32xf32>, vector<128x32xf32> -> vector<128x64xf32>
    %56 = vector.shape_cast %55 : vector<128x64xf32> to vector<1x128x64xf32>
    %c0_35 = arith.constant 0 : index
    %c0_36 = arith.constant 0 : index
    %c0_37 = arith.constant 0 : index
    %57 = vector.load %arg11[%c0_35, %c0_36, %c0_37] : memref<1x128x64xf32, #tpu.memory_space<vmem>>, vector<1x128x64xf32>
    tpu.vector_store %arg11[%c0_35, %c0_36, %c0_37], %56 {strides = array<i32>} : memref<1x128x64xf32, #tpu.memory_space<vmem>>, vector<1x128x64xf32>,
    return
  }
  func.func @transform_0(%arg0: i32) -> (i32, i32, i32) {
    %c0_i32 = arith.constant 0 : i32
    %c0_i32_0 = arith.constant 0 : i32
    %c0_i32_1 = arith.constant 0 : i32
    return %arg0, %c0_i32, %c0_i32_0 : i32, i32, i32
  }
  func.func @transform_1(%arg0: i32) -> (i32, i32) {
    %c0_i32 = arith.constant 0 : i32
    %c0_i32_0 = arith.constant 0 : i32
    %c0_i32_1 = arith.constant 0 : i32
    return %c0_i32, %c0_i32_0 : i32, i32
  }
  func.func @transform_2(%arg0: i32) -> (i32, i32) {
    %c0_i32 = arith.constant 0 : i32
    %c0_i32_0 = arith.constant 0 : i32
    %c0_i32_1 = arith.constant 0 : i32
    return %c0_i32, %c0_i32_0 : i32, i32
  }
  func.func @transform_3(%arg0: i32) -> (i32, i32, i32) {
    %c0_i32 = arith.constant 0 : i32
    %c0_i32_0 = arith.constant 0 : i32
    %c0_i32_1 = arith.constant 0 : i32
    return %arg0, %c0_i32, %c0_i32_0 : i32, i32, i32
  }
  func.func @transform_4(%arg0: i32) -> (i32, i32) {
    %c0_i32 = arith.constant 0 : i32
    %c0_i32_0 = arith.constant 0 : i32
    %c0_i32_1 = arith.constant 0 : i32
    return %c0_i32, %c0_i32_0 : i32, i32
  }
  func.func @transform_5(%arg0: i32) -> (i32, i32) {
    %c0_i32 = arith.constant 0 : i32
    %c0_i32_0 = arith.constant 0 : i32
    %c0_i32_1 = arith.constant 0 : i32
    return %c0_i32, %c0_i32_0 : i32, i32
  }
  func.func @transform_6(%arg0: i32) -> (i32, i32) {
    %c0_i32 = arith.constant 0 : i32
    %c0_i32_0 = arith.constant 0 : i32
    %c0_i32_1 = arith.constant 0 : i32
    return %c0_i32, %c0_i32_0 : i32, i32
  }
  func.func @transform_7(%arg0: i32) -> (i32, i32) {
    %c0_i32 = arith.constant 0 : i32
    %c0_i32_0 = arith.constant 0 : i32
    %c0_i32_1 = arith.constant 0 : i32
    return %c0_i32, %c0_i32_0 : i32, i32
  }
  func.func @transform_8(%arg0: i32) -> (i32, i32) {
    %c0_i32 = arith.constant 0 : i32
    %c0_i32_0 = arith.constant 0 : i32
    %c0_i32_1 = arith.constant 0 : i32
    return %c0_i32, %c0_i32_0 : i32, i32
  }
  func.func @transform_9(%arg0: i32) -> (i32, i32, i32) {
    %c0_i32 = arith.constant 0 : i32
    %c0_i32_0 = arith.constant 0 : i32
    %c0_i32_1 = arith.constant 0 : i32
    return %arg0, %c0_i32, %c0_i32_0 : i32, i32, i32
  }
  func.func @transform_10(%arg0: i32) -> (i32, i32, i32) {
    %c0_i32 = arith.constant 0 : i32
    %c0_i32_0 = arith.constant 0 : i32
    %c0_i32_1 = arith.constant 0 : i32
    return %arg0, %c0_i32, %c0_i32_0 : i32, i32, i32
  }
}

</mosaic_0001>

<bundles_post_ra>
// kernel: tpu_custom_call.1
= control target key start
LH: loop header
LB: loop body
LE: loop exit
PB: predicated region body
PF: predicated region fallthrough
CT: control target
= control target key end

     0   :  { %s2944_s13 = smov 0   ;;  %s4162_s0 = inlined_call_operand.vmem [shape: bf16[2,128,384], index: 0, kind: input, shape index: {}]   ;;  %s4163_s1 = inlined_call_operand.vmem [shape: bf16[384,128], index: 1, kind: input, shape index: {}]   ;;  %s4164_s2 = inlined_call_operand.vmem [shape: f32[1,128], index: 2, kind: input, shape index: {}]   ;;  %s4165_s3 = inlined_call_operand.vmem [shape: bf16[2,128,144], index: 3, kind: input, shape index: {}]   ;;  %s4166_s4 = inlined_call_operand.vmem [shape: bf16[144,128], index: 4, kind: input, shape index: {}]   ;;  %s4167_s5 = inlined_call_operand.vmem [shape: f32[128,8], index: 5, kind: input, shape index: {}]   ;;  %s4168_s6 = inlined_call_operand.vmem [shape: f32[1,8], index: 6, kind: input, shape index: {}]   ;;  %s4169_s7 = inlined_call_operand.vmem [shape: f32[8,128], index: 7, kind: input, shape index: {}]   ;;  %s4170_s8 = inlined_call_operand.vmem [shape: f32[1,128], index: 8, kind: input, shape index: {}]   ;;  %s4171_s9 = inlined_call_operand.vmem [shape: f32[2,128,32], index: 9, kind: input, shape index: {}]   ;;  %s4172_s10 = inlined_call_operand.vmem [shape: f32[2,128,64], index: 10, kind: output, shape index: {}]  }
   0x1 LB: > { %s2315_s14 = sadd.s32 4294967295, %s2884_s13   ;;  %p2319_p0 = scmp.ge.s32.totalorder %s2884_s13, 1  ;;  %s2884_s13 = sphi %s2944_s13, %s20_s13  }
   0x2   : > { %p332_p1 = scmp.lt.s32.totalorder %s2884_s13, 3 }
   0x4   : > { %p333_p2 = pnand %p2319_p0, %p332_p1 }
   0x6   : > { %336 = sbr.rel (%p333_p2) target bundleno = 1079 (0x437), region = 60 }
   0xb   : > { %v2955_v0 = vld [vmem:[%s4163_s1 + $0x78] sm:$0xff]  ;;  %p380_p3 = scmp.lt.s32.totalorder %s2315_s14, 1  ;;  %v2964_v2 = vld [vmem:[%s4163_s1 + $0x70] sm:$0xff]  ;;  %v2976_v4 = vld [vmem:[%s4163_s1 + $0x68] sm:$0xff]  ;;  %v2886_v62 = vmov 128.0   ;;  %vm1310_vm1 = vcmask 130048  }
   0xc   : > { %v2681_v1 = vld [vmem:[%s4163_s1 + $0x38] sm:$0xff]  ;;  %763 = vmatpush.bf16.msra.mxu2 %v2955_v0  ;;  %v2680_v3 = vld [vmem:[%s4163_s1 + $0x30] sm:$0xff]  ;;  %v2679_v5 = vld [vmem:[%s4163_s1 + $0x28] sm:$0xff]  ;;  %2744 = vrcp.f32 %v2886_v62  ;;  %vm829_vm2 = vcmask 64512   ;;  %s2887_s25 = smov 32   ;;  %s2888_s12 = smov 64  }
   0xd   : > { %s4196_s14 = smov (!%p380_p3, %s2315_s14), 1  ;;  %750 = vmatpush.bf16.msra.mxu3 %v2681_v1  ;;  %2723 = vmatpush.bf16.msra.mxu1 %v2681_v1  ;;  %v2994_v13 = vld [vmem:[%s4163_s1 + $0x60] sm:$0xff]  ;;  %v3010_v21 = vld [vmem:[%s4163_s1 + $0x58] sm:$0xff]  ;;  %v3029_v34 = vld [vmem:[%s4163_s1 + $0x50] sm:$0xff] }
   0xe   : > { %s2731_s23 = smul.u32 192, %s4196_s14  ;;  %1003 = vmatpush.bf16.msra.mxu0 %v2681_v1  ;;  %v2678_v15 = vld [vmem:[%s4163_s1 + $0x20] sm:$0xff]  ;;  %v2677_v25 = vld [vmem:[%s4163_s1 + $0x18] sm:$0xff]  ;;  %v2676_v39 = vld [vmem:[%s4163_s1 + $0x10] sm:$0xff]  ;;  %s3304_s30 = sshll.u32 %s4196_s14, 7 }
   0xf   : > { %v3049_v51 = vld [vmem:[%s4163_s1 + $0x48] sm:$0xff]  ;;  %s3369_s24 = scalar_lea.vmem %s4171_s9, %s3304_s30 }
  0x10   : > { %764 = vmatpush.bf16.msra.mxu2 %v2964_v2  ;;  %s2981_s28 = scalar_lea.vmem %s4162_s0, %s2731_s23  ;;  %v2675_v56 = vld [vmem:[%s4163_s1 + $0x8] sm:$0xff] }
  0x11   : > { %751 = vmatpush.bf16.msra.mxu3 %v2680_v3  ;;  %v401_v6 = vld [vmem:[%s2981_s28] sm:$0xff]  ;;  %2724 = vmatpush.bf16.msra.mxu1 %v2680_v3  ;;  %v403_v7 = vld [vmem:[%s2981_s28 + $0xc] sm:$0xff]  ;;  %v405_v8 = vld [vmem:[%s2981_s28 + $0x18] sm:$0xff] }
  0x12   : > { %v407_v9 = vld [vmem:[%s2981_s28 + $0x24] sm:$0xff]  ;;  %v433_v10 = vunpack.c.l.bf16 %v401_v6  ;;  %1004 = vmatpush.bf16.msra.mxu0 %v2680_v3  ;;  %v436_v11 = vunpack.c.l.bf16 %v403_v7  ;;  %v439_v12 = vunpack.c.l.bf16 %v405_v8  ;;  %v2997_v14 = vld [vmem:[%s2981_s28 + $0x30] sm:$0xff]  ;;  %v3003_v18 = vld [vmem:[%s2981_s28 + $0x3c] sm:$0xff]  ;;  %v434_v23 = vunpack.c.h.bf16 %v401_v6 }
  0x13   : > { %v442_v16 = vunpack.c.l.bf16 %v407_v9  ;;  %v445_v19 = vunpack.c.l.bf16 %v2997_v14  ;;  %v3013_v22 = vld [vmem:[%s2981_s28 + $0x48] sm:$0xff]  ;;  %v437_v24 = vunpack.c.h.bf16 %v403_v7  ;;  %v448_v26 = vunpack.c.l.bf16 %v3003_v18  ;;  %v3020_v28 = vld [vmem:[%s2981_s28 + $0x54] sm:$0xff]  ;;  %v3032_v35 = vld [vmem:[%s2981_s28 + $0x60] sm:$0xff] }
  0x14   : > { %765 = vmatpush.bf16.msra.mxu2 %v2976_v4  ;;  %v481_v17 = vadd.f32 %v436_v11, %v433_v10  ;;  %v440_v29 = vunpack.c.h.bf16 %v405_v8  ;;  %v402_v30 = vld [vmem:[%s2981_s28 + $0x8] sm:$0xf]  ;;  %v404_v31 = vld [vmem:[%s2981_s28 + $0x14] sm:$0xf]  ;;  %v451_v32 = vunpack.c.l.bf16 %v3013_v22  ;;  %v443_v36 = vunpack.c.h.bf16 %v407_v9  ;;  %v406_v38 = vld [vmem:[%s2981_s28 + $0x20] sm:$0xf] }
  0x15   : > { %752 = vmatpush.bf16.msra.mxu3 %v2679_v5  ;;  %2725 = vmatpush.bf16.msra.mxu1 %v2679_v5  ;;  %v502_v37 = vadd.f32 %v437_v24, %v434_v23  ;;  %v454_v40 = vunpack.c.l.bf16 %v3020_v28  ;;  %v435_v42 = vunpack.c.l.bf16 %v402_v30  ;;  %v438_v43 = vunpack.c.l.bf16 %v404_v31  ;;  %v3040_v44 = vld [vmem:[%s2981_s28 + $0x6c] sm:$0xff]  ;;  %v3052_v52 = vld [vmem:[%s2981_s28 + $0x78] sm:$0xff]  ;;  %v3061_v61 = vld [vmem:[%s2981_s28 + $0x84] sm:$0xff]  ;;  %v3092_v30 = vpop.eup %2744 }
  0x16   : > { %1005 = vmatpush.bf16.msra.mxu0 %v2679_v5  ;;  %v482_v20 = vadd.f32 %v481_v17, %v439_v12  ;;  %v446_v45 = vunpack.c.h.bf16 %v2997_v14  ;;  %v408_v47 = vld [vmem:[%s2981_s28 + $0x2c] sm:$0xf]  ;;  %v457_v48 = vunpack.c.l.bf16 %v3032_v35  ;;  %v441_v50 = vunpack.c.l.bf16 %v406_v38  ;;  %v410_v55 = vld [vmem:[%s2981_s28 + $0x38] sm:$0xf]  ;;  %v412_v3 = vld [vmem:[%s2981_s28 + $0x44] sm:$0xf] }
  0x17   : > { %v503_v46 = vadd.f32 %v502_v37, %v440_v29  ;;  %v449_v53 = vunpack.c.h.bf16 %v3003_v18  ;;  %v460_v57 = vunpack.c.l.bf16 %v3040_v44  ;;  %v444_v59 = vunpack.c.l.bf16 %v408_v47  ;;  %v3070_v9 = vld [vmem:[%s4163_s1 + $0x40] sm:$0xff]  ;;  %v3073_v10 = vld [vmem:[%s2981_s28 + $0x90] sm:$0xff]  ;;  %v3096_v31 = vld [vmem:[%s2981_s28 + $0xa8] sm:$0xff] }
  0x18   : > { %766 = vmatpush.bf16.msra.mxu2 %v2994_v13  ;;  %v483_v27 = vadd.f32 %v482_v20, %v442_v16  ;;  %v523_v60 = vadd.f32 %v438_v43, %v435_v42  ;;  %v452_v63 = vunpack.c.h.bf16 %v3013_v22  ;;  %v463_v5 = vunpack.c.l.bf16 %v3052_v52  ;;  %v414_v14 = vld [vmem:[%s2981_s28 + $0x50] sm:$0xf]  ;;  %v2674_v16 = vld [vmem:[%s4163_s1] sm:$0xff] }
  0x19   : > { %753 = vmatpush.bf16.msra.mxu3 %v2678_v15  ;;  %2726 = vmatpush.bf16.msra.mxu1 %v2678_v15  ;;  %v504_v54 = vadd.f32 %v503_v46, %v443_v36  ;;  %v447_v7 = vunpack.c.l.bf16 %v410_v55  ;;  %v455_v11 = vunpack.c.h.bf16 %v3020_v28  ;;  %v466_v17 = vunpack.c.l.bf16 %v3061_v61  ;;  %v3087_v22 = vld [vmem:[%s2981_s28 + $0x9c] sm:$0xff]  ;;  %v3104_v36 = vld [vmem:[%s4163_s1 + $0xb0] sm:$0xff] }
  0x1a   : > { %1006 = vmatpush.bf16.msra.mxu0 %v2678_v15  ;;  %v484_v33 = vadd.f32 %v483_v27, %v445_v19  ;;  %v524_v8 = vadd.f32 %v523_v60, %v441_v50  ;;  %v3080_v15 = vld [vmem:[%s4163_s1 + $0xb8] sm:$0xff]  ;;  %v450_v19 = vunpack.c.l.bf16 %v412_v3  ;;  %v458_v23 = vunpack.c.h.bf16 %v3032_v35  ;;  %v418_v35 = vld [vmem:[%s2981_s28 + $0x68] sm:$0xf]  ;;  %v424_v60 = vld [vmem:[%s2981_s28 + $0x8c] sm:$0xf] }
  0x1b   : > { %v505_v1 = vadd.f32 %v504_v54, %v446_v45  ;;  %v453_v28 = vunpack.c.l.bf16 %v414_v14  ;;  %v472_v37 = vunpack.c.l.bf16 %v3087_v22  ;;  %v464_v42 = vunpack.c.h.bf16 %v3052_v52  ;;  %v422_v54 = vld [vmem:[%s2981_s28 + $0x80] sm:$0xf]  ;;  %v3119_v52 = vld [vmem:[%s4163_s1 + $0xa8] sm:$0xff] }
  0x1c   : > { %767 = vmatpush.bf16.msra.mxu2 %v3010_v21  ;;  %v485_v41 = vadd.f32 %v484_v33, %v448_v26  ;;  %v525_v20 = vadd.f32 %v524_v8, %v444_v59  ;;  %v469_v26 = vunpack.c.l.bf16 %v3073_v10  ;;  %v475_v45 = vunpack.c.l.bf16 %v3096_v31 }
  0x1d   : > { %754 = vmatpush.bf16.msra.mxu3 %v2677_v25  ;;  %2727 = vmatpush.bf16.msra.mxu1 %v2677_v25  ;;  %v506_v12 = vadd.f32 %v505_v1, %v449_v53  ;;  %v459_v47 = vunpack.c.l.bf16 %v418_v35  ;;  %v467_v50 = vunpack.c.h.bf16 %v3061_v61  ;;  %v465_v62 = vunpack.c.l.bf16 %v422_v54 }
  0x1e   : > { %1007 = vmatpush.bf16.msra.mxu0 %v2677_v25  ;;  %v486_v49 = vadd.f32 %v485_v41, %v451_v32  ;;  %v416_v25 = vld [vmem:[%s2981_s28 + $0x5c] sm:$0xf]  ;;  %v526_v29 = vadd.f32 %v525_v20, %v447_v7  ;;  %v461_v32 = vunpack.c.h.bf16 %v3040_v44  ;;  %v431_v41 = vld [vmem:[%s2981_s28 + $0xb4] sm:$0xff]  ;;  %v473_v3 = vunpack.c.h.bf16 %v3087_v22  ;;  %v3130_v7 = vld [vmem:[%s4163_s1 + $0xa0] sm:$0xff] }
  0x1f   : > { %v507_v24 = vadd.f32 %v506_v12, %v452_v63  ;;  %v420_v44 = vld [vmem:[%s2981_s28 + $0x74] sm:$0xf]  ;;  %v478_v55 = vunpack.c.l.bf16 %v431_v41  ;;  %v476_v12 = vunpack.c.h.bf16 %v3096_v31  ;;  %v479_v20 = vunpack.c.h.bf16 %v431_v41 }
  0x20   : > { %768 = vmatpush.bf16.msra.mxu2 %v3029_v34  ;;  %v487_v58 = vadd.f32 %v486_v49, %v454_v40  ;;  %v527_v40 = vadd.f32 %v526_v29, %v450_v19  ;;  %v545_v49 = vmul.f32 128.0, %v3092_v30  ;;  %v432_v29 = vld [vmem:[%s2981_s28 + $0xbc] sm:$0xf]  ;;  %vm549_vm0 = vweird.f32 %v3092_v30 }
  0x21   : > { %755 = vmatpush.bf16.msra.mxu3 %v2676_v39  ;;  %2728 = vmatpush.bf16.msra.mxu1 %v2676_v39  ;;  %v508_v33 = vadd.f32 %v507_v24, %v455_v11 }
  0x22   : > { %1008 = vmatpush.bf16.msra.mxu0 %v2676_v39  ;;  %v488_v6 = vadd.f32 %v487_v58, %v457_v48  ;;  %v456_v39 = vunpack.c.l.bf16 %v416_v25  ;;  %v528_v48 = vadd.f32 %v527_v40, %v453_v28  ;;  %v546_v1 = vsub.f32 1.0, %v545_v49  ;;  %v3141_v25 = vld [vmem:[%s4163_s1 + $0x98] sm:$0xff]  ;;  %v2691_v49 = vld [vmem:[%s4163_s1 + $0x88] sm:$0xff] }
  0x23   : > { %v509_v43 = vadd.f32 %v508_v33, %v458_v23  ;;  %v430_v23 = vld [vmem:[%s2981_s28 + $0xb0] sm:$0xf] }
  0x24   : > { %769 = vmatpush.bf16.msra.mxu2 %v3049_v51  ;;  %v489_v18 = vadd.f32 %v488_v6, %v460_v57  ;;  %v462_v57 = vunpack.c.l.bf16 %v420_v44  ;;  %v529_v58 = vadd.f32 %v528_v48, %v456_v39  ;;  %v426_v6 = vld [vmem:[%s2981_s28 + $0x98] sm:$0xf]  ;;  %v547_v19 = vmul.f32 %v3092_v30, %v546_v1  ;;  %v799_v1 = vld [vmem:[%s4167_s5 + $0x50] sm:$0xff] }
  0x25   : > { %756 = vmatpush.bf16.msra.mxu3 %v2675_v56  ;;  %2729 = vmatpush.bf16.msra.mxu1 %v2675_v56  ;;  %v510_v53 = vadd.f32 %v509_v43, %v461_v32  ;;  %v477_v31 = vunpack.c.l.bf16 %v430_v23  ;;  %v480_v39 = vunpack.c.l.bf16 %v432_v29  ;;  %v2660_v43 = vld [vmem:[%s2981_s28 + $0x50] sm:$0xf0]  ;;  %v793_v23 = vld [vmem:[%s4167_s5 + $0x20] sm:$0xff]  ;;  %v790_v29 = vld [vmem:[%s4167_s5 + $0x8] sm:$0xff] }
  0x26   : > { %1009 = vmatpush.bf16.msra.mxu0 %v2675_v56  ;;  %v490_v27 = vadd.f32 %v489_v18, %v463_v5  ;;  %v530_v63 = vadd.f32 %v529_v58, %v459_v47  ;;  %v548_v33 = vadd.f32 %v3092_v30, %v547_v19  ;;  %v796_v19 = vld [vmem:[%s4167_s5 + $0x38] sm:$0xff] }
  0x27   : > { %v511_v59 = vadd.f32 %v510_v53, %v464_v42  ;;  %v2463_v42 = vld [vmem:[%s2981_s28 + $0x48] sm:$0xf]  ;;  %v804_v53 = vld [vmem:[%s4167_s5 + $0x78] sm:$0xff] }
  0x28   : > { %770 = vmatpush.bf16.msra.mxu2 %v3070_v9  ;;  %v491_v38 = vadd.f32 %v490_v27, %v466_v17  ;;  %v531_v11 = vadd.f32 %v530_v63, %v462_v57  ;;  %v471_v17 = vunpack.c.l.bf16 %v426_v6  ;;  %v2475_v6 = vld [vmem:[%s2981_s28 + $0x60] sm:$0xf] }
  0x29   : > { %757 = vmatpush.bf16.msra.mxu3 %v2674_v16  ;;  %2730 = vmatpush.bf16.msra.mxu1 %v2674_v16  ;;  %v512_v5 = vadd.f32 %v511_v59, %v467_v50 }
  0x2a   : > { %1010 = vmatpush.bf16.msra.mxu0 %v2674_v16  ;;  %v492_v46 = vadd.f32 %v491_v38, %v469_v26  ;;  %v532_v18 = vadd.f32 %v531_v11, %v465_v62  ;;  %v3151_v38 = vld [vmem:[%s4163_s1 + $0x90] sm:$0xff] }
  0x2c   : > { %776 = vmatpush.bf16.msrb.mxu2 %v3080_v15  ;;  %v493_v56 = vadd.f32 %v492_v46, %v472_v37  ;;  %v550_v46 = vsel %vm549_vm0, %v3092_v30, %v548_v33  ;;  %v2650_v33 = vld [vmem:[%s2981_s28 + $0x4] sm:$0xf] }
  0x2d   : > { %1052 = vmatpush.bf16.msrb.mxu1 %v2955_v0  ;;  %v470_v0 = vunpack.c.h.bf16 %v3073_v10  ;;  %v468_v10 = vunpack.c.l.bf16 %v424_v60  ;;  %806 = vmatpush.msrb.mxu3 %v804_v53  ;;  %v801_v60 = vld [vmem:[%s4167_s5 + $0x60] sm:$0xff] }
  0x2e   : > { %v494_v61 = vadd.f32 %v493_v56, %v475_v45  ;;  %v2464_v45 = vor.u32 %v2660_v43, %v2463_v42  ;;  %v802_v56 = vld [vmem:[%s4167_s5 + $0x68] sm:$0xff]  ;;  %v2447_v42 = vld [vmem:[%s2981_s28 + $0x20] sm:$0xf] }
  0x2f   : > { %v513_v14 = vadd.f32 %v512_v5, %v470_v0  ;;  %v533_v27 = vadd.f32 %v532_v18, %v468_v10  ;;  %v2690_v0 = vld [vmem:[%s4163_s1 + $0x80] sm:$0xff]  ;;  %v2669_v18 = vld [vmem:[%s2981_s28 + $0x98] sm:$0xf0]  ;;  %v2655_v43 = vld [vmem:[%s2981_s28 + $0x28] sm:$0xf0] }
  0x30   : > { %777 = vmatpush.bf16.msrb.mxu2 %v3104_v36  ;;  %v495_v8 = vadd.f32 %v494_v61, %v478_v55  ;;  %1026 = vmatmul.bf16.vlgmr.msra.gmra.mxu1 %v2464_v45  ;;  %v2448_v45 = vor.u32 %v2655_v43, %v2447_v42  ;;  %v2673_v42 = vld [vmem:[%s2981_s28 + $0xb8] sm:$0xf0]  ;;  %v2671_v43 = vld [vmem:[%s2981_s28 + $0xac] sm:$0xf] }
  0x31   : > { %1053 = vmatpush.bf16.msrb.mxu1 %v2964_v2  ;;  %v428_v2 = vld [vmem:[%s2981_s28 + $0xa4] sm:$0xf]  ;;  %v514_v22 = vadd.f32 %v513_v14, %v473_v3  ;;  %v534_v32 = vadd.f32 %v533_v27, %v471_v17 }
  0x32   : > { %v496_v16 = vrot.slane %v495_v8, 4  ;;  %v474_v26 = vunpack.c.l.bf16 %v428_v2  ;;  %v2666_v17 = vld [vmem:[%s2981_s28 + $0x80] sm:$0xf0] }
  0x33   : > { %v515_v28 = vadd.f32 %v514_v22, %v476_v12  ;;  %v794_v22 = vld [vmem:[%s4167_s5 + $0x28] sm:$0xff] }
  0x34   : > { %778 = vmatpush.bf16.msrb.mxu2 %v3119_v52  ;;  %v497_v24 = vadd.f32 %v496_v16, %v495_v8  ;;  %v535_v40 = vadd.f32 %v534_v32, %v474_v26  ;;  %v2663_v8 = vld [vmem:[%s2981_s28 + $0x68] sm:$0xf0]  ;;  %v2487_v16 = vld [vmem:[%s2981_s28 + $0x78] sm:$0xf]  ;;  %v2672_v26 = vld [vmem:[%s2981_s28 + $0xb0] sm:$0xf0] }
  0x35   : > { %1054 = vmatpush.bf16.msrb.mxu1 %v2976_v4  ;;  %v516_v35 = vadd.f32 %v515_v28, %v479_v20  ;;  %v2476_v11 = vor.u32 %v2663_v8, %v2475_v6  ;;  %v795_v20 = vld [vmem:[%s4167_s5 + $0x30] sm:$0xff]  ;;  %v2483_v8 = vld [vmem:[%s2981_s28 + $0x68] sm:$0xf] }
  0x36   : > { %v498_v4 = vrot.slane %v497_v24, 2  ;;  %v791_v28 = vld [vmem:[%s4167_s5 + $0x10] sm:$0xff] }
  0x37   : > { %v517_v41 = vrot.slane %v516_v35, 4  ;;  %v2652_v32 = vld [vmem:[%s2981_s28 + $0x10] sm:$0xf0] }
  0x38   : > { %779 = vmatpush.bf16.msrb.mxu2 %v3130_v7  ;;  %v499_v37 = vadd.f32 %v498_v4, %v497_v24  ;;  %v792_v24 = vld [vmem:[%s4167_s5 + $0x18] sm:$0xff]  ;;  %v789_v4 = vld [vmem:[%s4167_s5] sm:$0xff] }
  0x39   : > { %1055 = vmatpush.bf16.msrb.mxu1 %v2994_v13  ;;  %v536_v13 = vadd.f32 %v535_v40, %v477_v31  ;;  %v518_v47 = vadd.f32 %v517_v41, %v516_v35  ;;  %v2435_v31 = vld [vmem:[%s2981_s28 + $0x8] sm:$0xf] }
  0x3a   : > { %v500_v44 = vrot.slane %v499_v37, 1 }
  0x3b   : > { %v537_v50 = vadd.f32 %v536_v13, %v480_v39  ;;  %v519_v54 = vrot.slane %v518_v47, 2  ;;  %v2441_v13 = vld [vmem:[%s2981_s28 + $0x24] sm:$0xf0] }
  0x3c   : > { %780 = vmatpush.bf16.msrb.mxu2 %v3141_v25  ;;  %v501_v48 = vadd.f32 %v500_v44, %v499_v37  ;;  %v2436_v37 = vor.u32 %v2652_v32, %v2435_v31  ;;  %v2653_v44 = vld [vmem:[%s2981_s28 + $0x1c] sm:$0xf]  ;;  %v2507_v31 = vld [vmem:[%s2981_s28 + $0x98] sm:$0xf]  ;;  %v2670_v32 = vld [vmem:[%s2981_s28 + $0xa0] sm:$0xf0] }
  0x3d   : > { %1056 = vmatpush.bf16.msrb.mxu1 %v3010_v21  ;;  %v803_v21 = vld [vmem:[%s4167_s5 + $0x70] sm:$0xff]  ;;  %v538_v55 = vrot.slane %v537_v50, 4  ;;  %v520_v57 = vadd.f32 %v519_v54, %v518_v47  ;;  %v2459_v54 = vld [vmem:[%s2981_s28 + $0x38] sm:$0xf] }
  0x3e   : > { %v551_v30 = vmul.f32 %v550_v46, %v501_v48  ;;  %807 = vmatpush.msrb.mxu3 %v803_v21  ;;  %v2444_v48 = vor.u32 %v2653_v44, %v2441_v13  ;;  %v2513_v44 = vld [vmem:[%s2981_s28 + $0xb4] sm:$0xf0] }
  0x3f   : > { %v539_v59 = vadd.f32 %v538_v55, %v537_v50  ;;  %v521_v61 = vrot.slane %v520_v57, 1  ;;  %v2656_v55 = vld [vmem:[%s2981_s28 + $0x34] sm:$0xf] }
  0x40   : > { %781 = vmatpush.bf16.msrb.mxu2 %v3151_v38  ;;  %v554_v58 = vpack.c.bf16 %v551_v30, %v551_v30  ;;  %808 = vmatpush.msrb.mxu3 %v802_v56  ;;  %v2658_v30 = vld [vmem:[%s2981_s28 + $0x40] sm:$0xf0]  ;;  %v2453_v56 = vld [vmem:[%s2981_s28 + $0x3c] sm:$0xf0] }
  0x41   : > { %1057 = vmatpush.bf16.msrb.mxu1 %v3029_v34  ;;  %v540_v62 = vrot.slane %v539_v59, 2  ;;  %v800_v34 = vld [vmem:[%s4167_s5 + $0x58] sm:$0xff]  ;;  %v522_v63 = vadd.f32 %v521_v61, %v520_v57  ;;  %v2460_v57 = vor.u32 %v2658_v30, %v2459_v54  ;;  %v2659_v61 = vld [vmem:[%s2981_s28 + $0x4c] sm:$0xf] }
  0x42   : > { %758 = vmatmul.bf16.vlgmr.msra.gmra.mxu3 %v554_v58  ;;  %1031 = vmatmul.bf16.gmra.mxu1 %v2476_v11  ;;  %v2662_v11 = vld [vmem:[%s2981_s28 + $0x64] sm:$0xf] }
  0x43   : > { %809 = vmatpush.msrb.mxu3 %v801_v60  ;;  %v552_v3 = vmul.f32 %v550_v46, %v522_v63  ;;  %v541_v5 = vadd.f32 %v540_v62, %v539_v59  ;;  %v2471_v59 = vld [vmem:[%s2981_s28 + $0x50] sm:$0xf]  ;;  %v2661_v60 = vld [vmem:[%s2981_s28 + $0x58] sm:$0xf0]  ;;  %v2465_v62 = vld [vmem:[%s2981_s28 + $0x54] sm:$0xf0] }
  0x44   : > { %782 = vmatpush.bf16.msrb.mxu2 %v2691_v49  ;;  %v2468_v63 = vor.u32 %v2659_v61, %v2465_v62 }
  0x45   : > { %1058 = vmatpush.bf16.msrb.mxu1 %v3049_v51  ;;  %810 = vmatpush.msrb.mxu3 %v800_v34  ;;  %v555_v10 = vpack.c.bf16 %v552_v3, %v552_v3  ;;  %v542_v51 = vrot.slane %v541_v5, 1  ;;  %v2472_v34 = vor.u32 %v2661_v60, %v2471_v59  ;;  %v2651_v3 = vld [vmem:[%s2981_s28 + $0x8] sm:$0xf0]  ;;  %v805_v59 = vld [vmem:[%s4168_s6] sm:$0x1] }
  0x47   : > { %811 = vmatpush.msrb.mxu3 %v799_v1  ;;  %771 = vmatmul.bf16.vlgmr.msra.gmra.mxu2 %v555_v10  ;;  %v543_v12 = vadd.f32 %v542_v51, %v541_v5  ;;  %v2427_v1 = vld [vmem:[%s2981_s28] sm:$0xf]  ;;  %v2664_v10 = vld [vmem:[%s2981_s28 + $0x70] sm:$0xf0]  ;;  %v2477_v51 = vld [vmem:[%s2981_s28 + $0x6c] sm:$0xf0] }
  0x48   : > { %783 = vmatpush.bf16.msrb.mxu2 %v2690_v0  ;;  %v2722_v5 = vld [vmem:[%s4166_s4 + $0x40] sm:$0xff]  ;;  %v2428_v6 = vor.u32 %v2651_v3, %v2427_v1 }
  0x49   : > { %1059 = vmatpush.bf16.msrb.mxu1 %v3070_v9  ;;  %v553_v14 = vmul.f32 %v550_v46, %v543_v12  ;;  %v2488_v9 = vor.u32 %v2666_v17, %v2487_v16  ;;  %v605_v46 = vld [vmem:[%s4164_s2] sm:$0x1]  ;;  %1391 = vmatpush.bf16.msrb.mxu0 %v2722_v5  ;;  %v2484_v12 = vor.u32 %v2664_v10, %v2483_v8  ;;  %v2654_v16 = vld [vmem:[%s2981_s28 + $0x20] sm:$0xf0] }
  0x4a   : > { %1011 = vmatmul.bf16.vlgmr.msra.gmra.mxu0 %v2428_v6  ;;  %v827_v17 = vld [vmem:[%s4169_s7] sm:$0xff] }
  0x4b   : > { %v556_v2 = vpack.c.bf16 %v553_v14, %v553_v14  ;;  %v2480_v14 = vor.u32 %v2662_v11, %v2477_v51 }
  0x4c   : > { %1101 = vmatpush.bf16.msra.mxu2 %v3080_v15  ;;  %v2499_v15 = vld [vmem:[%s2981_s28 + $0x90] sm:$0xf] }
  0x50   : > { %1102 = vmatpush.bf16.msra.mxu2 %v3104_v36  ;;  %v2500_v36 = vor.u32 %v2669_v18, %v2499_v15  ;;  %v2721_v15 = vld [vmem:[%s4166_s4 + $0x38] sm:$0xff]  ;;  %v2720_v18 = vld [vmem:[%s4166_s4 + $0x30] sm:$0xff] }
  0x52   : > { %1036 = vmatmul.bf16.gmra.mxu1 %v2488_v9 }
  0x54   : > { %1103 = vmatpush.bf16.msra.mxu2 %v3119_v52  ;;  %v798_v52 = vld [vmem:[%s4167_s5 + $0x48] sm:$0xff] }
  0x55   : > { %812 = vmatpush.msrb.mxu3 %v798_v52  ;;  %v2495_v52 = vld [vmem:[%s2981_s28 + $0x80] sm:$0xf] }
  0x57   : > { %784 = vmatmul.bf16.vlgmr.msrb.gmra.mxu2 %v556_v2  ;;  %v2439_v2 = vld [vmem:[%s2981_s28 + $0x18] sm:$0xf] }
  0x58   : > { %1104 = vmatpush.bf16.msra.mxu2 %v3130_v7  ;;  %v797_v7 = vld [vmem:[%s4167_s5 + $0x40] sm:$0xff]  ;;  %v2440_v9 = vor.u32 %v2654_v16, %v2439_v2 }
  0x59   : > { %813 = vmatpush.msrb.mxu3 %v797_v7  ;;  %v2667_v7 = vld [vmem:[%s2981_s28 + $0x88] sm:$0xf0] }
  0x5a   : > { %1016 = vmatmul.bf16.gmra.mxu0 %v2440_v9 }
  0x5b   : > { %814 = vmatpush.msrb.mxu3 %v796_v19  ;;  %v2665_v19 = vld [vmem:[%s2981_s28 + $0x7c] sm:$0xf] }
  0x5c   : > { %1105 = vmatpush.bf16.msra.mxu2 %v3141_v25  ;;  %v2511_v25 = vld [vmem:[%s2981_s28 + $0xa8] sm:$0xf] }
  0x5d   : > { %815 = vmatpush.msrb.mxu3 %v795_v20  ;;  %v2512_v27 = vor.u32 %v2672_v26, %v2511_v25  ;;  %v2489_v20 = vld [vmem:[%s2981_s28 + $0x84] sm:$0xf0]  ;;  %v2451_v26 = vld [vmem:[%s2981_s28 + $0x30] sm:$0xf] }
  0x5e   : > { %v2719_v25 = vld [vmem:[%s4166_s4 + $0x28] sm:$0xff] }
  0x5f   : > { %816 = vmatpush.msrb.mxu3 %v794_v22  ;;  %v2496_v22 = vor.u32 %v2667_v7, %v2495_v52 }
  0x60   : > { %1106 = vmatpush.bf16.msra.mxu2 %v3151_v38  ;;  %v2429_v38 = vld [vmem:[%s2981_s28 + $0xc] sm:$0xf0] }
  0x61   : > { %817 = vmatpush.msrb.mxu3 %v793_v23  ;;  %v2432_v39 = vor.u32 %v2650_v33, %v2429_v38  ;;  %v2492_v23 = vor.u32 %v2665_v19, %v2489_v20  ;;  %v2508_v38 = vor.u32 %v2670_v32, %v2507_v31  ;;  %v1789_v32 = vld [vmem:[%s3369_s24 + $0x18] sm:$0xff] }
  0x62   : > { %1041 = vmatmul.bf16.gmra.mxu1 %v2500_v36 }
  0x63   : > { %818 = vmatpush.msrb.mxu3 %v792_v24 }
  0x64   : > { %1107 = vmatpush.bf16.msra.mxu2 %v2691_v49 }
  0x65   : > { %819 = vmatpush.msrb.mxu3 %v791_v28  ;;  %v2718_v28 = vld [vmem:[%s4166_s4 + $0x20] sm:$0xff] }
  0x67   : > { %820 = vmatpush.msrb.mxu3 %v790_v29 }
  0x68   : > { %1108 = vmatpush.bf16.msra.mxu2 %v2690_v0  ;;  %v2456_v0 = vor.u32 %v2656_v55, %v2453_v56 }
  0x69   : > { %821 = vmatpush.msrb.mxu3 %v789_v4  ;;  %v2717_v4 = vld [vmem:[%s4166_s4 + $0x18] sm:$0xff] }
  0x6b   : > { %1109 = vmatmul.bf16.vlgmr.msra.gmra.mxu2 %v2436_v37  ;;  %848 = vmatpush.msra.mxu3 %v827_v17  ;;  %v2501_v37 = vld [vmem:[%s2981_s28 + $0x9c] sm:$0xf0] }
  0x72   : > { %1046 = vmatmul.bf16.gmra.mxu1 %v2512_v27  ;;  %v2657_v27 = vld [vmem:[%s2981_s28 + $0x38] sm:$0xf0] }
  0x73   : > { %v2452_v29 = vor.u32 %v2657_v27, %v2451_v26  ;;  %v1788_v27 = vld [vmem:[%s3369_s24 + $0x10] sm:$0xff] }
  0x74   : > { %1822 = vrot.lane.b32.xlu1 %v1788_v27, %s2887_s25 }
  0x75   : > { %1021 = vmatmul.bf16.gmra.mxu0 %v2452_v29 }
  0x7b   : > { %1114 = vmatmul.bf16.gmra.mxu2 %v2448_v45  ;;  %v2516_v45 = vor.u32 %v2671_v43, %v2513_v44 }
  0x7c   : > { %1824 = vrot.lane.b32.xlu1 %v1789_v32, %s2887_s25 }
  0x82   : > { %1060 = vmatmul.bf16.vlgmr.msrb.gmra.mxu1 %v2432_v39 }
  0x8b   : > { %1119 = vmatmul.bf16.gmra.mxu2 %v2460_v57 }
  0x92   : > { %1065 = vmatmul.bf16.gmra.mxu1 %v2444_v48  ;;  %v2716_v48 = vld [vmem:[%s4166_s4 + $0x10] sm:$0xff] }
  0x9b   : > { %1124 = vmatmul.bf16.gmra.mxu2 %v2472_v34 }
  0xa2   : > { %1070 = vmatmul.bf16.gmra.mxu1 %v2456_v0 }
  0xab   : > { %1129 = vmatmul.bf16.gmra.mxu2 %v2484_v12 }
  0xad   : > { %v3268_v36 = vpop.f32.mrf.mxu1 }
  0xb2   : > { %1075 = vmatmul.bf16.gmra.mxu1 %v2468_v63 }
  0xb5   : > { %v3274_v24 = vpop.f32.mrf.mxu1 }
  0xbb   : > { %1134 = vmatmul.bf16.gmra.mxu2 %v2496_v22 }
  0xbf   : > { %v3289_v33 = vpop.f32.mrf.mxu1 }
  0xc2   : > { %1080 = vmatmul.bf16.gmra.mxu1 %v2480_v14 }
  0xc5   : > { %v759_v35 = vpop.f32.mrf.mxu3 }
  0xc6   : > { %v760_v49 = vadd.f32 %v759_v35, %v605_v46  ;;  %v2668_v35 = vld [vmem:[%s2981_s28 + $0x94] sm:$0xf] }
  0xc7   : > { %v2504_v39 = vor.u32 %v2668_v35, %v2501_v37  ;;  %v1787_v35 = vld [vmem:[%s3369_s24 + $0x8] sm:$0xff] }
  0xca   : > { %v772_v40 = vpop.f32.mrf.mxu2 }
  0xcb   : > { %v773_v50 = vadd.f32 %v772_v40, %v760_v49  ;;  %1139 = vmatmul.bf16.gmra.mxu2 %v2508_v38  ;;  %v3293_v40 = vpop.f32.mrf.mxu1  ;;  %v2715_v49 = vld [vmem:[%s4166_s4 + $0x8] sm:$0xff] }
  0xcd   : > { %v761_v41 = vpop.f32.mrf.mxu3 }
  0xce   : > { %v2519_v41 = vld [vmem:[%s2981_s28 + $0xb0] sm:$0xf]  ;;  %s3313_s28 = scalar_lea.vmem %s4165_s3, %s3304_s30 }
  0xcf   : > { %v2520_v13 = vor.u32 %v2673_v42, %v2519_v41  ;;  %v2700_v56 = vld [vmem:[%s3313_s28 + $0x14] sm:$0xf]  ;;  %v2533_v57 = vld [vmem:[%s3313_s28 + $0x18] sm:$0xf0]  ;;  %v2702_v62 = vld [vmem:[%s3313_s28 + $0x24] sm:$0xf]  ;;  %v3387_v41 = vpop.f32.mrf.mxu0 }
  0xd0   : > { %v2541_v34 = vld [vmem:[%s3313_s28 + $0x28] sm:$0xf0]  ;;  %v2523_v5 = vld [vmem:[%s3313_s28] sm:$0xf]  ;;  %v2699_v6 = vld [vmem:[%s3313_s28 + $0x4] sm:$0xf0] }
  0xd1   : > { %v2544_v1 = vor.u32 %v2702_v62, %v2541_v34  ;;  %v2524_v8 = vor.u32 %v2699_v6, %v2523_v5  ;;  %v2704_v11 = vld [vmem:[%s3313_s28 + $0x34] sm:$0xf]  ;;  %v2549_v51 = vld [vmem:[%s3313_s28 + $0x38] sm:$0xf0]  ;;  %v2531_v2 = vld [vmem:[%s3313_s28 + $0x10] sm:$0xf] }
  0xd2   : > { %v774_v47 = vpop.f32.mrf.mxu2  ;;  %1085 = vmatmul.bf16.gmra.mxu1 %v2492_v23  ;;  %v2552_v14 = vor.u32 %v2704_v11, %v2549_v51  ;;  %v2701_v16 = vld [vmem:[%s3313_s28 + $0x14] sm:$0xf0]  ;;  %v2557_v52 = vld [vmem:[%s3313_s28 + $0x48] sm:$0xf0]  ;;  %v2539_v20 = vld [vmem:[%s3313_s28 + $0x20] sm:$0xf] }
  0xd3   : > { %v3299_v46 = vpop.f32.mrf.mxu1  ;;  %v2532_v9 = vor.u32 %v2701_v16, %v2531_v2  ;;  %v2703_v22 = vld [vmem:[%s3313_s28 + $0x24] sm:$0xf0]  ;;  %v2708_v29 = vld [vmem:[%s3313_s28 + $0x54] sm:$0xf]  ;;  %v2547_v38 = vld [vmem:[%s3313_s28 + $0x30] sm:$0xf] }
  0xd4   : > { %4173 = vst [vmem:[#allocation2_spill] sm:$0xff] %v3299_v46  ;;  %v2712_v34 = vld [vmem:[%s3313_s28 + $0x74] sm:$0xf]  ;;  %v2709_v11 = vld [vmem:[%s3313_s28 + $0x54] sm:$0xf0]  ;;  %v1791_v2 = vld [vmem:[%s3369_s24 + $0x28] sm:$0xff] }
  0xd5   : > { %v1795_v16 = vld [vmem:[%s3369_s24 + $0x48] sm:$0xff] }
  0xda   : > { %v785_v53 = vpop.f32.mrf.mxu2 }
  0xdb   : > { %v786_v21 = vadd.f32 %v785_v53, %v773_v50  ;;  %1144 = vmatmul.bf16.gmra.mxu2 %v2520_v13  ;;  %v3301_v47 = vpop.f32.mrf.mxu1  ;;  %v2698_v50 = vld [vmem:[%s3313_s28 + $0x4] sm:$0xf]  ;;  %v2525_v53 = vld [vmem:[%s3313_s28 + $0x8] sm:$0xf0]  ;;  %v3394_v13 = vpop.f32.mrf.mxu0 }
  0xdc   : > { %v2528_v54 = vor.u32 %v2698_v50, %v2525_v53 }
  0xdd   : > { %822 = vmatmul.f32.vlgmr.msrb.gmra.mxu3 %v786_v21  ;;  %v2714_v21 = vld [vmem:[%s4166_s4] sm:$0xff] }
  0xde   : > { %1335 = vmatpush.bf16.msrb.mxu3 %v2721_v15  ;;  %2621 = vmatmul.msk.bf16.vlgmr.msrb.gmra.mxu0 %vm1310_vm1, %v2528_v54  ;;  %v2707_v54 = vld [vmem:[%s3313_s28 + $0x44] sm:$0xf0] }
  0xe2   : > { %v787_v58 = vpop.f32.mrf.mxu2  ;;  %1336 = vmatpush.bf16.msrb.mxu3 %v2720_v18  ;;  %1090 = vmatmul.bf16.gmra.mxu1 %v2504_v39  ;;  %v2706_v18 = vld [vmem:[%s3313_s28 + $0x44] sm:$0xf]  ;;  %v2705_v39 = vld [vmem:[%s3313_s28 + $0x34] sm:$0xf0] }
  0xe3   : > { %v3323_v30 = vpop.f32.mrf.mxu1  ;;  %v2536_v58 = vor.u32 %v2700_v56, %v2533_v57  ;;  %v2560_v19 = vor.u32 %v2706_v18, %v2557_v52  ;;  %v2548_v43 = vor.u32 %v2705_v39, %v2547_v38  ;;  %v3405_v57 = vpop.f32.mrf.mxu0  ;;  %v2713_v38 = vld [vmem:[%s3313_s28 + $0x74] sm:$0xf0] }
  0xe6   : > { %1337 = vmatpush.bf16.msrb.mxu3 %v2719_v25  ;;  %v2540_v25 = vor.u32 %v2703_v22, %v2539_v20  ;;  %v2711_v20 = vld [vmem:[%s3313_s28 + $0x64] sm:$0xf0] }
  0xea   : > { %1338 = vmatpush.bf16.msrb.mxu3 %v2718_v28  ;;  %v1786_v28 = vld [vmem:[%s3369_s24] sm:$0xff] }
  0xeb   : > { %v3326_v55 = vpop.f32.mrf.mxu1  ;;  %1818 = vrot.lane.b32.xlu0 %v1786_v28, %s2887_s25  ;;  %v1796_v28 = vld [vmem:[%s3369_s24 + $0x50] sm:$0xff] }
  0xee   : > { %1339 = vmatpush.bf16.msrb.mxu3 %v2717_v4  ;;  %2622 = vmatmul.msk.bf16.gmra.mxu0 %vm1310_vm1, %v2536_v58  ;;  %v3347_v12 = vpop.f32.mrf.mxu2  ;;  %v2565_v4 = vld [vmem:[%s3313_s28 + $0x58] sm:$0xf0] }
  0xef   : > { %v2568_v37 = vor.u32 %v2708_v29, %v2565_v4 }
  0xf2   : > { %1095 = vmatmul.bf16.gmra.mxu1 %v2516_v45  ;;  %1340 = vmatpush.bf16.msrb.mxu3 %v2716_v48  ;;  %v2710_v48 = vld [vmem:[%s3313_s28 + $0x64] sm:$0xf] }
  0xf3   : > { %v3331_v0 = vpop.f32.mrf.mxu1  ;;  %1820 = vrot.lane.b32.xlu0 %v1787_v35, %s2887_s25  ;;  %v1794_v35 = vld [vmem:[%s3369_s24 + $0x40] sm:$0xff] }
  0xf6   : > { %1341 = vmatpush.bf16.msrb.mxu3 %v2715_v49  ;;  %v3354_v15 = vpop.f32.mrf.mxu2  ;;  %v2573_v49 = vld [vmem:[%s3313_s28 + $0x68] sm:$0xf0] }
  0xf7   : > { %v2576_v50 = vor.u32 %v2710_v48, %v2573_v49 }
  0xfa   : > { %1342 = vmatpush.bf16.msrb.mxu3 %v2714_v21  ;;  %v2555_v21 = vld [vmem:[%s3313_s28 + $0x40] sm:$0xf] }
  0xfb   : > { %v3338_v3 = vpop.f32.mrf.mxu1  ;;  %v2556_v56 = vor.u32 %v2707_v54, %v2555_v21  ;;  %v828_v54 = vld [vmem:[%s4170_s8] sm:$0x1] }
  0xfe   : > { %2623 = vmatmul.msk.bf16.gmra.mxu0 %vm1310_vm1, %v2544_v1  ;;  %v3362_v23 = vpop.f32.mrf.mxu2  ;;  %v3419_v1 = vpop.f32.mrf.mxu0 }
 0x103   : > { %v3343_v10 = vpop.f32.mrf.mxu1 }
 0x106   : > { %v3379_v31 = vpop.f32.mrf.mxu2 }
 0x10b   : > { %v3352_v17 = vpop.f32.mrf.mxu1 }
 0x10e   : > { %2624 = vmatmul.msk.bf16.gmra.mxu0 %vm1310_vm1, %v2552_v14  ;;  %v3392_v44 = vpop.f32.mrf.mxu2 }
 0x113   : > { %v3358_v7 = vpop.f32.mrf.mxu1 }
 0x116   : > { %v3400_v53 = vpop.f32.mrf.mxu2 }
 0x11b   : > { %v3371_v26 = vpop.f32.mrf.mxu1 }
 0x11e   : > { %2625 = vmatmul.msk.bf16.gmra.mxu0 %vm1310_vm1, %v2560_v19  ;;  %v3415_v62 = vpop.f32.mrf.mxu2  ;;  %v2571_v19 = vld [vmem:[%s3313_s28 + $0x60] sm:$0xf] }
 0x11f   : > { %v2572_v27 = vor.u32 %v2711_v20, %v2571_v19  ;;  %v1801_v19 = vld [vmem:[%s3369_s24 + $0x78] sm:$0xff] }
 0x123   : > { %v3389_v42 = vpop.f32.mrf.mxu1 }
 0x126   : > { %v3426_v14 = vpop.f32.mrf.mxu2 }
 0x12b   : > { %v3396_v45 = vpop.f32.mrf.mxu1 }
 0x12e   : > { %2626 = vmatmul.msk.bf16.gmra.mxu0 %vm1310_vm1, %v2568_v37  ;;  %v3436_v52 = vpop.f32.mrf.mxu2  ;;  %v2579_v37 = vld [vmem:[%s3313_s28 + $0x70] sm:$0xf] }
 0x12f   : > { %4174 = vst [vmem:[#allocation3_spill] sm:$0xff] %v3436_v52 }
 0x133   : > { %v3407_v58 = vpop.f32.mrf.mxu1 }
 0x136   : > { %v3445_v29 = vpop.f32.mrf.mxu2 }
 0x137   : > { %4176 = vst [vmem:[#allocation5_spill] sm:$0xff] %v3445_v29 }
 0x13b   : > { %v3421_v6 = vpop.f32.mrf.mxu1 }
 0x13e   : > { %2627 = vmatmul.msk.bf16.gmra.mxu0 %vm1310_vm1, %v2576_v50  ;;  %v3456_v39 = vpop.f32.mrf.mxu2  ;;  %v1798_v50 = vld [vmem:[%s3369_s24 + $0x60] sm:$0xff] }
 0x13f   : > { %4178 = vst [vmem:[#allocation7_spill] sm:$0xff] %v3456_v39 }
 0x143   : > { %v3434_v18 = vpop.f32.mrf.mxu1 }
 0x146   : > { %v3464_v21 = vpop.f32.mrf.mxu2 }
 0x160   : > { %v823_v60 = vpop.f32.mrf.mxu3 }
 0x161   : > { %v824_v61 = vadd.f32 %v823_v60, %v805_v59  ;;  %v1792_v59 = vld [vmem:[%s3369_s24 + $0x30] sm:$0xff]  ;;  %v1790_v60 = vld [vmem:[%s3369_s24 + $0x20] sm:$0xff] }
 0x162   : > { %1830 = vrot.lane.b32.xlu0 %v1792_v59, %s2887_s25  ;;  %1826 = vrot.lane.b32.xlu2 %v1790_v60, %s2887_s25 }
 0x163   : > { %v826_v63 = vmax.f32 %v824_v61, 0.0  ;;  %v1793_v61 = vld [vmem:[%s3369_s24 + $0x38] sm:$0xff] }
 0x164   : > { %1832 = vrot.lane.b32.xlu1 %v1793_v61, %s2887_s25  ;;  %v1797_v61 = vld [vmem:[%s3369_s24 + $0x58] sm:$0xff] }
 0x165   : > { %2423 = vmatmul.msk.f32.vlgmr.msra.gmra.mxu3 %vm829_vm2, %v826_v63  ;;  %v2581_v63 = vld [vmem:[%s3313_s28 + $0x78] sm:$0xf0] }
 0x166   : > { %v2584_v5 = vor.u32 %v2712_v34, %v2581_v63  ;;  %v1799_v63 = vld [vmem:[%s3369_s24 + $0x68] sm:$0xff] }
 0x168   : > { %2628 = vmatmul.msk.bf16.gmra.mxu0 %vm1310_vm1, %v2584_v5 }
 0x16a   : > { %1828 = vrot.lane.b32.xlu2 %v1791_v2, %s2887_s25  ;;  %1836 = vrot.lane.b32.xlu0 %v1795_v16, %s2887_s25  ;;  %v1800_v16 = vld [vmem:[%s3369_s24 + $0x70] sm:$0xff] }
 0x16c   : > { %1838 = vrot.lane.b32.xlu1 %v1796_v28, %s2887_s25 }
 0x16d   : > { %1343 = vmatmul.bf16.vlgmr.msrb.gmra.mxu3 %v2524_v8  ;;  %v2563_v8 = vld [vmem:[%s3313_s28 + $0x50] sm:$0xf]  ;;  %s4091_s28 = scalar_lea.vmem %s4172_s10, %s3304_s30 }
 0x16e   : > { %v2564_v51 = vor.u32 %v2709_v11, %v2563_v8  ;;  %v3475_v8 = vpop.f32.mrf.mxu2 }
 0x172   : > { %1834 = vrot.lane.b32.xlu2 %v1794_v35, %s2887_s25  ;;  %1842 = vrot.lane.b32.xlu0 %v1798_v50, %s2887_s25  ;;  %v3488_v50 = vld [vmem:[%s4164_s2] ss:$0 sm:$0xff] }
 0x173   : > { %v1043_v29 = vadd.f32 %v3488_v50, %v3323_v30  ;;  %v1050_v30 = vadd.f32 %v3488_v50, %v3338_v3 }
 0x174   : > { %1844 = vrot.lane.b32.xlu1 %v1799_v63, %s2887_s25 }
 0x176   : > { %v1142_v28 = vpop.f32.mrf.mxu2 }
 0x17a   : > { %1840 = vrot.lane.b32.xlu2 %v1797_v61, %s2887_s25  ;;  %1848 = vrot.lane.b32.xlu0 %v1801_v19, %s2887_s25  ;;  %v1015_v61 = vadd.f32 %v3488_v50, %v3394_v13 }
 0x17d   : > { %1348 = vmatmul.bf16.gmra.mxu3 %v2532_v9  ;;  %v3430_v9 = vpop.f32.mrf.mxu0 }
 0x182   : > { %1846 = vrot.lane.b32.xlu2 %v1800_v16, %s2887_s25 }
 0x185   : > { %v3440_v22 = vpop.f32.mrf.mxu0 }
 0x18d   : > { %1353 = vmatmul.bf16.gmra.mxu3 %v2540_v25  ;;  %v3442_v25 = vpop.f32.mrf.mxu1  ;;  %v3448_v4 = vpop.f32.mrf.mxu0 }
 0x18e   : > { %4175 = vst [vmem:[#allocation4_spill] sm:$0xff] %v3442_v25 }
 0x195   : > { %v3450_v32 = vpop.f32.mrf.mxu1  ;;  %v3458_v48 = vpop.f32.mrf.mxu0 }
 0x196   : > { %4177 = vst [vmem:[#allocation6_spill] sm:$0xff] %v3450_v32 }
 0x19d   : > { %1358 = vmatmul.bf16.gmra.mxu3 %v2548_v43  ;;  %v2580_v43 = vor.u32 %v2713_v38, %v2579_v37  ;;  %v3460_v49 = vpop.f32.mrf.mxu1 }
 0x1a5   : > { %v1091_v59 = vpop.f32.mrf.mxu1 }
 0x1a6   : > { %v1092_v3 = vadd.f32 %v1091_v59, %v1043_v29 }
 0x1a8   : > { %v1141_v59 = vadd.f32 %v3475_v8, %v1092_v3 }
 0x1ad   : > { %1363 = vmatmul.bf16.gmra.mxu3 %v2556_v56  ;;  %v3469_v56 = vpop.f32.mrf.mxu0  ;;  %v1093_v2 = vpop.f32.mrf.mxu1 }
 0x1b5   : > { %v1096_v38 = vpop.f32.mrf.mxu1 }
 0x1bd   : > { %1368 = vmatmul.bf16.gmra.mxu3 %v2564_v51  ;;  %v3477_v51 = vpop.f32.mrf.mxu0 }
 0x1c5   : > { %v3483_v37 = vpop.f32.mrf.mxu0 }
 0x1cd   : > { %1373 = vmatmul.bf16.gmra.mxu3 %v2572_v27 }
 0x1dd   : > { %1378 = vmatmul.bf16.gmra.mxu3 %v2580_v43 }
 0x1e8   : > { %v850_v60 = vpop.f32.mrf.mxu3 }
 0x1e9   : > { %v851_v34 = vadd.f32 %v850_v60, %v828_v54  ;;  %v1013_v60 = vadd.f32 %v3488_v50, %v3387_v41  ;;  %v1045_v41 = vadd.f32 %v3488_v50, %v3326_v55  ;;  %v1023_v55 = vadd.f32 %v3488_v50, %v3430_v9 }
 0x1eb   : > { %v2424_v5 = vmul.f32 -1.442695, %v851_v34  ;;  %v1018_v34 = vadd.f32 %v3488_v50, %v3405_v57  ;;  %v1062_v13 = vadd.f32 %v3343_v10, %v1013_v60  ;;  %v1020_v57 = vadd.f32 %v3488_v50, %v3419_v1  ;;  %v3513_v60 = vpop.f32.mrf.mxu0  ;;  %v1098_v1 = vpop.f32.mrf.mxu1 }
 0x1ec   : > { %v1072_v52 = vadd.f32 %v3389_v42, %v1023_v55 }
 0x1ed   : > { %2746 = vpow2.f32 %v2424_v5  ;;  %v1145_v5 = vpop.f32.mrf.mxu2  ;;  %v1067_v46 = vadd.f32 %v3358_v7, %v1018_v34  ;;  %v1094_v34 = vadd.f32 %v1093_v2, %v1045_v41 }
 0x1f0   : > { %v1344_v11 = vpop.f32.mrf.mxu3 }
 0x1f3   : > { %v2747_v20 = vpop.eup %2746  ;;  %v1408_v8 = vpop.f32.mrf.mxu0 }
 0x1f4   : > { %v856_v27 = vadd.f32 1.0, %v2747_v20  ;;  %v1040_v20 = vadd.f32 %v3488_v50, %v3301_v47  ;;  %v1048_v47 = vadd.f32 %v3488_v50, %v3331_v0 }
 0x1f5   : > { %v1147_v29 = vpop.f32.mrf.mxu2 }
 0x1f6   : > { %2748 = vrcp.f32 %v856_v27  ;;  %v868_v16 = vand.u32 2147483648, %v856_v27  ;;  %v866_v32 = vand.u32 2147483647, %v856_v27  ;;  %vm862_vm4 = vweird.f32 %v856_v27 }
 0x1f7   : > { %v1089_v7 = vadd.f32 %v3460_v49, %v1040_v20 }
 0x1f8   : > { %v1346_v35 = vpop.f32.mrf.mxu3  ;;  %v869_v10 = vor.u32 1.1754944e-38, %v868_v16  ;;  %vm867_vm6 = vcmp.eq.f32.partialorder %v866_v32, 8.507059e+37  ;;  %v1097_v16 = vadd.f32 %v1096_v38, %v1048_v47 }
 0x1fa   : > { %v1146_v38 = vadd.f32 %v1145_v5, %v1097_v16 }
 0x1fc   : > { %v2749_v43 = vpop.eup %2748 }
 0x1fd   : > { %v858_v54 = vmul.f32 %v2749_v43, %v856_v27  ;;  %vm863_vm3 = vweird.f32 %v2749_v43 }
 0x1fe   : > { %vm864_vm5 = vmor %vm862_vm4, %vm863_vm3 }
 0x1ff   : > { %v859_v63 = vsub.f32 1.0, %v858_v54  ;;  %v1064_v54 = vadd.f32 %v3352_v17, %v1015_v61  ;;  %v1111_v17 = vadd.f32 %v3347_v12, %v1062_v13  ;;  %v1116_v61 = vadd.f32 %v3362_v23, %v1067_v46 }
 0x200   : > { %v1349_v19 = vpop.f32.mrf.mxu3  ;;  %v1394_v12 = vadd.f32 %v3448_v4, %v1344_v11  ;;  %v1138_v23 = vadd.f32 %v3464_v21, %v1089_v7  ;;  %v1143_v4 = vadd.f32 %v1142_v28, %v1094_v34 }
 0x201   : > { %v860_v39 = vmul.f32 %v2749_v43, %v859_v63  ;;  %v1113_v27 = vadd.f32 %v3354_v15, %v1064_v54  ;;  %v1399_v11 = vadd.f32 %v3469_v56, %v1349_v19 }
 0x203   : > { %v861_v25 = vadd.f32 %v2749_v43, %v860_v39  ;;  %v1069_v39 = vadd.f32 %v3371_v26, %v1020_v57  ;;  %v1396_v26 = vadd.f32 %v3458_v48, %v1346_v35 }
 0x205   : > { %v865_v63 = vsel %vm864_vm5, %v2749_v43, %v861_v25  ;;  %v1099_v25 = vadd.f32 %v1098_v1, %v1050_v30  ;;  %v1118_v15 = vadd.f32 %v3379_v31, %v1069_v39  ;;  %v1121_v31 = vadd.f32 %v3392_v44, %v1072_v52 }
 0x206   : > { %v870_v0 = vsel %vm867_vm6, %v869_v10, %v865_v63  ;;  %v1410_v63 = vpop.f32.mrf.mxu0 }
 0x207   : > { %v3520_v9 = vperm.slane %v870_v0, 0  ;;  %v1148_v20 = vadd.f32 %v1147_v29, %v1099_v25  ;;  %v1035_v29 = vadd.f32 %v3488_v50, %v3293_v40  ;;  %v4182_v40 = vld [vmem:[#allocation5_spill] sm:$0xff] }
 0x208   : > { %v1351_v32 = vpop.f32.mrf.mxu3 }
 0x209   : > { %v1434_v49 = vmul.f32 %v3520_v9, %v1111_v17  ;;  %v1435_v43 = vmul.f32 %v3520_v9, %v1113_v27  ;;  %v1436_v46 = vmul.f32 %v3520_v9, %v1116_v61  ;;  %v1401_v48 = vadd.f32 %v3477_v51, %v1351_v32 }
 0x20a   : > { %v1437_v35 = vmul.f32 %v3520_v9, %v1118_v15  ;;  %v3544_v41 = vmul.f32 %v3520_v9, %v1138_v23  ;;  %v3547_v56 = vmul.f32 %v3520_v9, %v1141_v59  ;;  %v1025_v51 = vadd.f32 %v3488_v50, %v3440_v22 }
 0x20b   : > { %v3531_v42 = vadd.f32 %v1434_v49, %v1394_v12  ;;  %v3533_v2 = vadd.f32 %v1435_v43, %v1396_v26  ;;  %v3541_v21 = vadd.f32 %v1436_v46, %v1399_v11  ;;  %v3552_v44 = vmul.f32 %v3520_v9, %v1143_v4  ;;  %v4180_v11 = vld [vmem:[#allocation4_spill] sm:$0xff] }
 0x20c   : > { %v3555_v52 = vmul.f32 %v3520_v9, %v1146_v38  ;;  %v3558_v28 = vmul.f32 %v3520_v9, %v1148_v20  ;;  %v3560_v5 = vadd.f32 %v1437_v35, %v1401_v48  ;;  %v1438_v57 = vmul.f32 %v3520_v9, %v1121_v31  ;;  %v4181_v31 = vld [vmem:[#allocation2_spill] sm:$0xff] }
 0x20d   : > { %2750 = vtanh.f32 %v3531_v42  ;;  %v1074_v22 = vadd.f32 %v3396_v45, %v1025_v51  ;;  %v1033_v32 = vadd.f32 %v3488_v50, %v3289_v33  ;;  %v4179_v33 = vld [vmem:[#allocation3_spill] sm:$0xff]  ;;  %v1084_v48 = vadd.f32 %v4180_v11, %v1035_v29 }
 0x20e   : > { %2752 = vtanh.f32 %v3533_v2  ;;  %v1413_v34 = vpop.f32.mrf.mxu0  ;;  %v1038_v38 = vadd.f32 %v3488_v50, %v4181_v31 }
 0x20f   : > { %2754 = vtanh.f32 %v3541_v21  ;;  %v1123_v55 = vadd.f32 %v3400_v53, %v1074_v22  ;;  %v1082_v43 = vadd.f32 %v3434_v18, %v1033_v32  ;;  %v1133_v20 = vadd.f32 %v4182_v40, %v1084_v48 }
 0x210   : > { %v1354_v19 = vpop.f32.mrf.mxu3  ;;  %2756 = vtanh.f32 %v3560_v5 }
 0x211   : > { %v1404_v13 = vadd.f32 %v3483_v37, %v1354_v19  ;;  %v1028_v37 = vadd.f32 %v3488_v50, %v3268_v36  ;;  %v1439_v17 = vmul.f32 %v3520_v9, %v1123_v55  ;;  %v1030_v36 = vadd.f32 %v3488_v50, %v3274_v24  ;;  %v3621_v50 = vpop.permute.xlu2 %1826 }
 0x212   : > { %v1131_v46 = vadd.f32 %v4179_v33, %v1082_v43  ;;  %v1443_v19 = vmul.f32 %v3520_v9, %v1133_v20 }
 0x213   : > { %v2751_v54 = vpop.eup %2750  ;;  %v3566_v47 = vadd.f32 %v1438_v57, %v1404_v13  ;;  %v1077_v0 = vadd.f32 %v3407_v58, %v1028_v37  ;;  %v1079_v58 = vadd.f32 %v3421_v6, %v1030_v36  ;;  %v4183_v57 = vld [vmem:[#allocation6_spill] sm:$0xff] }
 0x214   : > { %v2753_v30 = vpop.eup %2752  ;;  %1898 = vrot.lane.b32.xlu1 %v2751_v54, %s2887_s25  ;;  %v1442_v59 = vmul.f32 %v3520_v9, %v1131_v46  ;;  %v1087_v54 = vadd.f32 %v4183_v57, %v1038_v38 }
 0x215   : > { %2758 = vtanh.f32 %v3566_v47  ;;  %1900 = vrot.lane.b32.xlu2 %v2753_v30, %s2887_s25  ;;  %v2755_v10 = vpop.eup %2754  ;;  %v1126_v53 = vadd.f32 %v3415_v62, %v1077_v0  ;;  %v1128_v24 = vadd.f32 %v3426_v14, %v1079_v58  ;;  %v4184_v30 = vld [vmem:[#allocation7_spill] sm:$0xff] }
 0x216   : > { %1902 = vrot.lane.b32.xlu0 %v2755_v10, %s2887_s25  ;;  %v2757_v7 = vpop.eup %2756  ;;  %v1415_v6 = vpop.f32.mrf.mxu0  ;;  %v1136_v37 = vadd.f32 %v4184_v30, %v1087_v54 }
 0x217   : > { %v1440_v61 = vmul.f32 %v3520_v9, %v1126_v53  ;;  %v1441_v49 = vmul.f32 %v3520_v9, %v1128_v24 }
 0x218   : > { %v1356_v1 = vpop.f32.mrf.mxu3 }
 0x219   : > { %v1406_v45 = vadd.f32 %v3513_v60, %v1356_v1 }
 0x21b   : > { %v2759_v39 = vpop.eup %2758  ;;  %v3579_v27 = vadd.f32 %v1439_v17, %v1406_v45  ;;  %v2630_v17 = vmul.f32 -1.442695, %v3533_v2 }
 0x21c   : > { %1904 = vrot.lane.b32.xlu1 %v2757_v7, %s2887_s25 }
 0x21d   : > { %2760 = vtanh.f32 %v3579_v27  ;;  %1906 = vrot.lane.b32.xlu2 %v2759_v39, %s2887_s25 }
 0x21e   : > { %v1418_v35 = vpop.f32.mrf.mxu0 }
 0x220   : > { %v1359_v60 = vpop.f32.mrf.mxu3 }
 0x221   : > { %v1409_v3 = vadd.f32 %v1408_v8, %v1359_v60  ;;  %v2633_v60 = vmul.f32 -1.442695, %v3566_v47 }
 0x223   : > { %v2761_v16 = vpop.eup %2760  ;;  %v3589_v25 = vadd.f32 %v1440_v61, %v1409_v3  ;;  %v3630_v3 = vpop.permute.xlu2 %1828 }
 0x224   : > { %1908 = vrot.lane.b32.xlu0 %v2761_v16, %s2887_s25 }
 0x225   : > { %2762 = vtanh.f32 %v3589_v25 }
 0x226   : > { %v1420_v10 = vpop.f32.mrf.mxu0 }
 0x228   : > { %v1361_v62 = vpop.f32.mrf.mxu3 }
 0x229   : > { %v1411_v12 = vadd.f32 %v1410_v63, %v1361_v62  ;;  %v1444_v63 = vmul.f32 %v3520_v9, %v1136_v37  ;;  %v2629_v62 = vmul.f32 -1.442695, %v3531_v42  ;;  %v3661_v42 = vpop.permute.xlu1 %1822 }
 0x22b   : > { %v2763_v26 = vpop.eup %2762  ;;  %v3598_v15 = vadd.f32 %v1441_v49, %v1411_v12  ;;  %v3639_v32 = vpop.permute.xlu2 %1834 }
 0x22c   : > { %1910 = vrot.lane.b32.xlu1 %v2763_v26, %s2887_s25  ;;  %v3648_v12 = vpop.permute.xlu0 %1818 }
 0x22d   : > { %2764 = vtanh.f32 %v3598_v15 }
 0x22e   : > { %v1423_v36 = vpop.f32.mrf.mxu0 }
 0x230   : > { %v1364_v14 = vpop.f32.mrf.mxu3 }
 0x231   : > { %v1414_v23 = vadd.f32 %v1413_v34, %v1364_v14 }
 0x233   : > { %v2765_v4 = vpop.eup %2764  ;;  %v3607_v18 = vadd.f32 %v1442_v59, %v1414_v23  ;;  %v3658_v46 = vpop.permute.xlu2 %1840  ;;  %v2632_v23 = vmul.f32 -1.442695, %v3560_v5 }
 0x234   : > { %1912 = vrot.lane.b32.xlu2 %v2765_v4, %s2887_s25  ;;  %v3669_v11 = vpop.permute.xlu0 %1820 }
 0x235   : > { %2766 = vtanh.f32 %v3607_v18 }
 0x238   : > { %v1366_v8 = vpop.f32.mrf.mxu3 }
 0x239   : > { %v1416_v51 = vadd.f32 %v1415_v6, %v1366_v8  ;;  %v3682_v8 = vpop.permute.xlu1 %1824 }
 0x23b   : > { %v2767_v13 = vpop.eup %2766  ;;  %v3616_v22 = vadd.f32 %v1443_v19, %v1416_v51  ;;  %v3678_v5 = vpop.permute.xlu2 %1846 }
 0x23c   : > { %1914 = vrot.lane.b32.xlu0 %v2767_v13, %s2887_s25  ;;  %v3690_v37 = vpop.permute.xlu0 %1830 }
 0x23d   : > { %2768 = vtanh.f32 %v3616_v22 }
 0x240   : > { %v1369_v55 = vpop.f32.mrf.mxu3 }
 0x241   : > { %v1419_v1 = vadd.f32 %v1418_v35, %v1369_v55 }
 0x243   : > { %v2769_v45 = vpop.eup %2768  ;;  %v3625_v7 = vadd.f32 %v1444_v63, %v1419_v1 }
 0x244   : > { %1916 = vrot.lane.b32.xlu1 %v2769_v45, %s2887_s25 }
 0x245   : > { %2770 = vtanh.f32 %v3625_v7 }
 0x246   : > { %2772 = vpow2.f32 %v2630_v17 }
 0x248   : > { %v1371_v39 = vpop.f32.mrf.mxu3 }
 0x249   : > { %v1421_v0 = vadd.f32 %v1420_v10, %v1371_v39 }
 0x24b   : > { %v2771_v53 = vpop.eup %2770  ;;  %v3633_v9 = vadd.f32 %v3544_v41, %v1421_v0  ;;  %v1425_v41 = vpop.f32.mrf.mxu0 }
 0x24c   : > { %1918 = vrot.lane.b32.xlu2 %v2771_v53, %s2887_s25  ;;  %v2773_v2 = vpop.eup %2772 }
 0x24d   : > { %2774 = vtanh.f32 %v3633_v9  ;;  %v3637_v61 = vadd.f32 1.0, %v2773_v2 }
 0x24e   : > { %2776 = vpow2.f32 %v2633_v60 }
 0x24f   : > { %2778 = vrcp.f32 %v3637_v61  ;;  %v1556_v17 = vand.u32 2147483648, %v3637_v61  ;;  %vm1550_vm8 = vweird.f32 %v3637_v61  ;;  %v1554_v39 = vand.u32 2147483647, %v3637_v61 }
 0x250   : > { %v1374_v34 = vpop.f32.mrf.mxu3 }
 0x251   : > { %v1424_v16 = vadd.f32 %v1423_v36, %v1374_v34  ;;  %v1557_v2 = vor.u32 1.1754944e-38, %v1556_v17  ;;  %vm1555_vm10 = vcmp.eq.f32.partialorder %v1554_v39, 8.507059e+37 }
 0x253   : > { %v2775_v58 = vpop.eup %2774  ;;  %v3642_v47 = vadd.f32 %v3547_v56, %v1424_v16  ;;  %v2631_v56 = vmul.f32 -1.442695, %v3541_v21  ;;  %v1428_v21 = vpop.f32.mrf.mxu0 }
 0x254   : > { %1920 = vrot.lane.b32.xlu0 %v2775_v58, %s2887_s25  ;;  %v2777_v24 = vpop.eup %2776  ;;  %v2635_v58 = vmul.f32 -1.442695, %v3589_v25 }
 0x255   : > { %2780 = vtanh.f32 %v3642_v47  ;;  %v3650_v49 = vadd.f32 1.0, %v2777_v24  ;;  %v3652_v6 = vpop.eup %2778  ;;  %v3720_v24 = vpop.permute.xlu0 %1836 }
 0x256   : > { %2782 = vpow2.f32 %v2629_v62  ;;  %v1546_v14 = vmul.f32 %v3652_v6, %v3637_v61  ;;  %vm1551_vm7 = vweird.f32 %v3652_v6 }
 0x257   : > { %2784 = vrcp.f32 %v3650_v49  ;;  %vm1552_vm9 = vmor %vm1550_vm8, %vm1551_vm7  ;;  %vm1595_vm12 = vweird.f32 %v3650_v49  ;;  %v1599_v25 = vand.u32 2147483647, %v3650_v49 }
 0x258   : > { %v1376_v26 = vpop.f32.mrf.mxu3  ;;  %v1547_v31 = vsub.f32 1.0, %v1546_v14 }
 0x259   : > { %v1426_v43 = vadd.f32 %v1425_v41, %v1376_v26  ;;  %vm1600_vm14 = vcmp.eq.f32.partialorder %v1599_v25, 8.507059e+37 }
 0x25a   : > { %v1548_v51 = vmul.f32 %v3652_v6, %v1547_v31 }
 0x25b   : > { %v2781_v29 = vpop.eup %2780  ;;  %v3656_v33 = vadd.f32 %v3552_v44, %v1426_v43  ;;  %v2636_v44 = vmul.f32 -1.442695, %v3598_v15  ;;  %v1430_v57 = vpop.f32.mrf.mxu0 }
 0x25c   : > { %1922 = vrot.lane.b32.xlu1 %v2781_v29, %s2887_s25  ;;  %v2783_v4 = vpop.eup %2782  ;;  %v1549_v1 = vadd.f32 %v3652_v6, %v1548_v51  ;;  %v1601_v29 = vand.u32 2147483648, %v3650_v49 }
 0x25d   : > { %2786 = vtanh.f32 %v3656_v33  ;;  %v3671_v35 = vpop.eup %2784  ;;  %v3680_v15 = vadd.f32 1.0, %v2783_v4  ;;  %v3747_v51 = vpop.permute.xlu0 %1842 }
 0x25e   : > { %2788 = vpow2.f32 %v2631_v56  ;;  %v1591_v19 = vmul.f32 %v3671_v35, %v3650_v49  ;;  %v1553_v36 = vsel %vm1552_vm9, %v3652_v6, %v1549_v1  ;;  %vm1596_vm11 = vweird.f32 %v3671_v35 }
 0x25f   : > { %2790 = vpow2.f32 %v2632_v23  ;;  %v3718_v41 = vsel %vm1555_vm10, %v1557_v2, %v1553_v36  ;;  %vm1597_vm13 = vmor %vm1595_vm12, %vm1596_vm11  ;;  %v1541_v39 = vand.u32 2147483648, %v3680_v15  ;;  %vm1535_vm0 = vweird.f32 %v3680_v15 }
 0x260   : > { %v1379_v59 = vpop.f32.mrf.mxu3  ;;  %2792 = vpow2.f32 %v2636_v44  ;;  %v1592_v63 = vsub.f32 1.0, %v1591_v19  ;;  %v2637_v2 = vmul.f32 -1.442695, %v3607_v18 }
 0x261   : > { %v1429_v48 = vadd.f32 %v1428_v21, %v1379_v59 }
 0x262   : > { %v1593_v60 = vmul.f32 %v3671_v35, %v1592_v63 }
 0x263   : > { %v2787_v38 = vpop.eup %2786  ;;  %v3674_v40 = vadd.f32 %v3555_v52, %v1429_v48  ;;  %v2634_v52 = vmul.f32 -1.442695, %v3579_v27  ;;  %v1602_v48 = vor.u32 1.1754944e-38, %v1601_v29  ;;  %v1542_v29 = vor.u32 1.1754944e-38, %v1541_v39 }
 0x264   : > { %v2789_v20 = vpop.eup %2788  ;;  %1924 = vrot.lane.b32.xlu2 %v2787_v38, %s2887_s25  ;;  %v1594_v26 = vadd.f32 %v3671_v35, %v1593_v60  ;;  %v1539_v60 = vand.u32 2147483647, %v3680_v15 }
 0x265   : > { %2794 = vtanh.f32 %v3674_v40  ;;  %v3687_v13 = vadd.f32 1.0, %v2789_v20  ;;  %v2791_v30 = vpop.eup %2790  ;;  %v2639_v20 = vmul.f32 -1.442695, %v3625_v7 }
 0x266   : > { %v2793_v10 = vpop.eup %2792  ;;  %2796 = vrcp.f32 %v3680_v15  ;;  %v3703_v0 = vadd.f32 1.0, %v2791_v30  ;;  %v1598_v23 = vsel %vm1597_vm13, %v3671_v35, %v1594_v26  ;;  %vm1540_vm6 = vcmp.eq.f32.partialorder %v1539_v60, 8.507059e+37 }
 0x267   : > { %2798 = vrcp.f32 %v3687_v13  ;;  %v3707_v53 = vadd.f32 1.0, %v2793_v10  ;;  %v3744_v38 = vsel %vm1600_vm14, %v1602_v48, %v1598_v23  ;;  %v1569_v36 = vand.u32 2147483647, %v3687_v13 }
 0x268   : > { %v1381_v54 = vpop.f32.mrf.mxu3  ;;  %2800 = vpow2.f32 %v2634_v52  ;;  %vm1565_vm3 = vweird.f32 %v3687_v13  ;;  %vm1580_vm9 = vweird.f32 %v3703_v0 }
 0x269   : > { %v1431_v55 = vadd.f32 %v1430_v57, %v1381_v54  ;;  %vm3793_vm5 = vcmp.eq.f32.partialorder %v1569_v36, 8.507059e+37  ;;  %vm1640_vm11 = vweird.f32 %v3707_v53 }
 0x26b   : > { %v2795_v45 = vpop.eup %2794  ;;  %v3698_v27 = vadd.f32 %v3558_v28, %v1431_v55  ;;  %v3710_v28 = vpop.permute.xlu1 %1832 }
 0x26c   : > { %1926 = vrot.lane.b32.xlu0 %v2795_v45, %s2887_s25  ;;  %v3712_v16 = vpop.eup %2796 }
 0x26d   : > { %2802 = vtanh.f32 %v3698_v27  ;;  %v3714_v61 = vpop.eup %2798  ;;  %v1531_v56 = vmul.f32 %v3712_v16, %v3680_v15  ;;  %vm1536_vm15 = vweird.f32 %v3712_v16 }
 0x26e   : > { %2804 = vrcp.f32 %v3703_v0  ;;  %v2801_v62 = vpop.eup %2800  ;;  %v1561_v21 = vmul.f32 %v3714_v61, %v3687_v13  ;;  %vm1566_vm1 = vweird.f32 %v3714_v61  ;;  %vm3775_vm2 = vmor %vm1535_vm0, %vm1536_vm15 }
 0x26f   : > { %v1901_v34 = vpop.permute.xlu2 %1900  ;;  %2806 = vrcp.f32 %v3707_v53  ;;  %v3733_v14 = vadd.f32 1.0, %v2801_v62  ;;  %v1532_v4 = vsub.f32 1.0, %v1531_v56  ;;  %v1571_v56 = vand.u32 2147483648, %v3687_v13  ;;  %vm3789_vm4 = vmor %vm1565_vm3, %vm1566_vm1 }
 0x270   : > { %v1947_v43 = vmul.f32 %v1901_v34, %v3718_v41  ;;  %2808 = vpow2.f32 %v2635_v58  ;;  %v1562_v19 = vsub.f32 1.0, %v1561_v21  ;;  %v3771_v34 = vpop.permute.xlu0 %1848 }
 0x271   : > { %2810 = vrcp.f32 %v3733_v14  ;;  %v1533_v54 = vmul.f32 %v3712_v16, %v1532_v4  ;;  %v1616_v21 = vand.u32 2147483648, %v3733_v14  ;;  %vm1610_vm0 = vweird.f32 %v3733_v14 }
 0x272   : > { %2812 = vpow2.f32 %v2639_v20  ;;  %v1563_v7 = vmul.f32 %v3714_v61, %v1562_v19 }
 0x273   : > { %v2803_v6 = vpop.eup %2802  ;;  %v3738_v44 = vpop.permute.xlu1 %1838  ;;  %v1534_v63 = vadd.f32 %v3712_v16, %v1533_v54 }
 0x274   : > { %1980 = vrot.lane.b32.xlu0 %v1947_v43, %s2887_s25  ;;  %1928 = vrot.lane.b32.xlu1 %v2803_v6, %s2887_s25  ;;  %v3740_v59 = vpop.eup %2804  ;;  %v1564_v58 = vadd.f32 %v3714_v61, %v1563_v7  ;;  %v2638_v7 = vmul.f32 -1.442695, %v3616_v22 }
 0x275   : > { %v3742_v31 = vpop.eup %2806  ;;  %v1576_v35 = vmul.f32 %v3740_v59, %v3703_v0  ;;  %v1538_v15 = vsel %vm3775_vm2, %v3712_v16, %v1534_v63  ;;  %vm1581_vm7 = vweird.f32 %v3740_v59 }
 0x276   : > { %v2809_v57 = vpop.eup %2808  ;;  %v1636_v30 = vmul.f32 %v3742_v31, %v3707_v53  ;;  %v1568_v16 = vsel %vm3789_vm4, %v3714_v61, %v1564_v58  ;;  %v3801_v23 = vsel %vm1540_vm6, %v1542_v29, %v1538_v15  ;;  %vm1641_vm8 = vweird.f32 %v3742_v31  ;;  %vm3816_vm10 = vmor %vm1580_vm9, %vm1581_vm7 }
 0x277   : > { %v1907_v49 = vpop.permute.xlu2 %1906  ;;  %v3758_v55 = vadd.f32 1.0, %v2809_v57  ;;  %v1577_v10 = vsub.f32 1.0, %v1576_v35  ;;  %v3764_v17 = vpop.eup %2810  ;;  %v1586_v61 = vand.u32 2147483648, %v3703_v0  ;;  %v1646_v57 = vand.u32 2147483648, %v3707_v53  ;;  %vm3832_vm12 = vmor %vm1640_vm11, %vm1641_vm8 }
 0x278   : > { %v1950_v52 = vmul.f32 %v1907_v49, %v3744_v38  ;;  %v1637_v45 = vsub.f32 1.0, %v1636_v30  ;;  %v2813_v43 = vpop.eup %2812  ;;  %v1606_v18 = vmul.f32 %v3764_v17, %v3733_v14  ;;  %v1584_v30 = vand.u32 2147483647, %v3703_v0 }
 0x279   : > { %2814 = vrcp.f32 %v3758_v55  ;;  %v1578_v26 = vmul.f32 %v3740_v59, %v1577_v10  ;;  %v3804_v4 = vadd.f32 1.0, %v2813_v43  ;;  %v1644_v10 = vand.u32 2147483647, %v3707_v53 }
 0x27a   : > { %v1638_v6 = vmul.f32 %v3742_v31, %v1637_v45  ;;  %2816 = vpow2.f32 %v2637_v2  ;;  %v1607_v49 = vsub.f32 1.0, %v1606_v18  ;;  %v1587_v2 = vor.u32 1.1754944e-38, %v1586_v61 }
 0x27b   : > { %v3760_v1 = vpop.permute.xlu1 %1844  ;;  %v1579_v13 = vadd.f32 %v3740_v59, %v1578_v26  ;;  %2818 = vrcp.f32 %v3804_v4  ;;  %v1647_v58 = vor.u32 1.1754944e-38, %v1646_v57  ;;  %vm1585_vm13 = vcmp.eq.f32.partialorder %v1584_v30, 8.507059e+37 }
 0x27c   : > { %1986 = vrot.lane.b32.xlu0 %v1950_v52, %s2887_s25  ;;  %v1639_v20 = vadd.f32 %v3742_v31, %v1638_v6  ;;  %v1572_v52 = vor.u32 1.1754944e-38, %v1571_v56  ;;  %v1608_v53 = vmul.f32 %v3764_v17, %v1607_v49  ;;  %2820 = vpow2.f32 %v2638_v7 }
 0x27d   : > { %v1583_v22 = vsel %vm3816_vm10, %v3740_v59, %v1579_v13  ;;  %vm1645_vm14 = vcmp.eq.f32.partialorder %v1644_v10, 8.507059e+37  ;;  %vm1611_vm15 = vweird.f32 %v3764_v17  ;;  %v2642_v13 = vmul.f32 -1.442695, %v3656_v33 }
 0x27e   : > { %v3827_v63 = vsel %vm3793_vm5, %v1572_v52, %v1568_v16  ;;  %v1643_v36 = vsel %vm3832_vm12, %v3742_v31, %v1639_v20  ;;  %v3846_v26 = vsel %vm1585_vm13, %v1587_v2, %v1583_v22  ;;  %v1609_v18 = vadd.f32 %v3764_v17, %v1608_v53  ;;  %vm1612_vm1 = vmor %vm1610_vm0, %vm1611_vm15 }
 0x27f   : > { %v3809_v35 = vpop.eup %2814  ;;  %v3851_v43 = vsel %vm1645_vm14, %v1647_v58, %v1643_v36  ;;  %v1614_v16 = vand.u32 2147483647, %v3733_v14  ;;  %v1617_v14 = vor.u32 1.1754944e-38, %v1616_v21  ;;  %v1631_v7 = vand.u32 2147483648, %v3758_v55 }
 0x280   : > { %v2817_v0 = vpop.eup %2816  ;;  %v1621_v39 = vmul.f32 %v3809_v35, %v3758_v55  ;;  %v1613_v49 = vsel %vm1612_vm1, %v3764_v17, %v1609_v18  ;;  %vm1626_vm3 = vweird.f32 %v3809_v35  ;;  %vm1625_vm4 = vweird.f32 %v3758_v55 }
 0x281   : > { %v3848_v59 = vadd.f32 1.0, %v2817_v0  ;;  %v3857_v25 = vpop.eup %2818  ;;  %vm1615_vm2 = vcmp.eq.f32.partialorder %v1614_v16, 8.507059e+37  ;;  %v1629_v10 = vand.u32 2147483647, %v3758_v55  ;;  %v2640_v45 = vmul.f32 -1.442695, %v3633_v9  ;;  %vm1627_vm5 = vmor %vm1625_vm4, %vm1626_vm3 }
 0x282   : > { %v1622_v6 = vsub.f32 1.0, %v1621_v39  ;;  %v3872_v33 = vsel %vm1615_vm2, %v1617_v14, %v1613_v49  ;;  %v1632_v36 = vor.u32 1.1754944e-38, %v1631_v7  ;;  %vm1686_vm7 = vweird.f32 %v3857_v25 }
 0x283   : > { %2822 = vrcp.f32 %v3848_v59  ;;  %vm1630_vm6 = vcmp.eq.f32.partialorder %v1629_v10, 8.507059e+37  ;;  %vm1685_vm8 = vweird.f32 %v3804_v4  ;;  %v1689_v18 = vand.u32 2147483647, %v3804_v4 }
 0x284   : > { %v1623_v20 = vmul.f32 %v3809_v35, %v1622_v6  ;;  %2824 = vpow2.f32 %v2642_v13  ;;  %vm1687_vm9 = vmor %vm1685_vm8, %vm1686_vm7  ;;  %v1661_v14 = vand.u32 2147483648, %v3848_v59  ;;  %vm1655_vm12 = vweird.f32 %v3848_v59 }
 0x285   : > { %vm1690_vm10 = vcmp.eq.f32.partialorder %v1689_v18, 8.507059e+37 }
 0x286   : > { %v1899_v48 = vpop.permute.xlu1 %1898  ;;  %v1624_v57 = vadd.f32 %v3809_v35, %v1623_v20  ;;  %v1662_v7 = vor.u32 1.1754944e-38, %v1661_v14 }
 0x287   : > { %v1946_v19 = vmul.f32 %v1899_v48, %v3801_v23  ;;  %v2821_v48 = vpop.eup %2820 }
 0x288   : > { %v1903_v60 = vpop.permute.xlu0 %1902  ;;  %v3874_v52 = vadd.f32 1.0, %v2821_v48  ;;  %v1628_v22 = vsel %vm1627_vm5, %v3809_v35, %v1624_v57 }
 0x289   : > { %1978 = vrot.lane.b32.xlu2 %v1946_v19, %s2887_s25  ;;  %v1948_v62 = vmul.f32 %v1903_v60, %v3827_v63  ;;  %v1681_v19 = vmul.f32 %v3857_v25, %v3804_v4  ;;  %v2823_v30 = vpop.eup %2822  ;;  %v3888_v60 = vsel %vm1630_vm6, %v1632_v36, %v1628_v22 }
 0x28a   : > { %2826 = vrcp.f32 %v3874_v52  ;;  %v2825_v0 = vpop.eup %2824  ;;  %v1651_v53 = vmul.f32 %v2823_v30, %v3848_v59  ;;  %vm1656_vm11 = vweird.f32 %v2823_v30  ;;  %v1676_v36 = vand.u32 2147483648, %v3874_v52 }
 0x28b   : > { %1982 = vrot.lane.b32.xlu1 %v1948_v62, %s2887_s25  ;;  %v1682_v54 = vsub.f32 1.0, %v1681_v19  ;;  %2828 = vpow2.f32 %v2640_v45  ;;  %v3890_v55 = vadd.f32 1.0, %v2825_v0  ;;  %vm1657_vm13 = vmor %vm1655_vm12, %vm1656_vm11  ;;  %vm1670_vm0 = vweird.f32 %v3874_v52 }
 0x28c   : > { %v1652_v2 = vsub.f32 1.0, %v1651_v53 }
 0x28d   : > { %v1683_v39 = vmul.f32 %v3857_v25, %v1682_v54  ;;  %2830 = vrcp.f32 %v3890_v55  ;;  %vm1730_vm4 = vweird.f32 %v3890_v55 }
 0x28e   : > { %v1913_v15 = vpop.permute.xlu2 %1912  ;;  %v1905_v31 = vpop.permute.xlu1 %1904 }
 0x28f   : > { %v1953_v56 = vmul.f32 %v1913_v15, %v3851_v43  ;;  %v1949_v29 = vmul.f32 %v1905_v31, %v3846_v26  ;;  %v1684_v58 = vadd.f32 %v3857_v25, %v1683_v39  ;;  %v1691_v15 = vand.u32 2147483648, %v3804_v4 }
 0x290   : > { %v2827_v35 = vpop.eup %2826  ;;  %v2641_v31 = vmul.f32 -1.442695, %v3642_v47 }
 0x291   : > { %1992 = vrot.lane.b32.xlu0 %v1953_v56, %s2887_s25  ;;  %1984 = vrot.lane.b32.xlu2 %v1949_v29, %s2887_s25  ;;  %v2829_v6 = vpop.eup %2828  ;;  %v1653_v56 = vmul.f32 %v2823_v30, %v1652_v2  ;;  %v1666_v29 = vmul.f32 %v2827_v35, %v3874_v52  ;;  %v1688_v21 = vsel %vm1687_vm9, %v3857_v25, %v1684_v58  ;;  %v1692_v16 = vor.u32 1.1754944e-38, %v1691_v15 }
 0x292   : > { %2832 = vpow2.f32 %v2641_v31  ;;  %v3903_v13 = vadd.f32 1.0, %v2829_v6  ;;  %v1659_v25 = vand.u32 2147483647, %v3848_v59  ;;  %vm1671_vm15 = vweird.f32 %v2827_v35 }
 0x293   : > { %v3905_v47 = vsel %vm1690_vm10, %v1692_v16, %v1688_v21  ;;  %v1654_v4 = vadd.f32 %v2823_v30, %v1653_v56  ;;  %v1667_v49 = vsub.f32 1.0, %v1666_v29  ;;  %v2831_v19 = vpop.eup %2830  ;;  %vm1672_vm1 = vmor %vm1670_vm0, %vm1671_vm15  ;;  %v1677_v15 = vor.u32 1.1754944e-38, %v1676_v36 }
 0x294   : > { %2834 = vrcp.f32 %v3903_v13  ;;  %vm1660_vm14 = vcmp.eq.f32.partialorder %v1659_v25, 8.507059e+37  ;;  %vm1731_vm3 = vweird.f32 %v2831_v19  ;;  %v1736_v29 = vand.u32 2147483648, %v3890_v55 }
 0x295   : > { %v1658_v57 = vsel %vm1657_vm13, %v2823_v30, %v1654_v4  ;;  %v1668_v54 = vmul.f32 %v2827_v35, %v1667_v49  ;;  %v1674_v30 = vand.u32 2147483647, %v3874_v52  ;;  %v2644_v21 = vmul.f32 -1.442695, %v3698_v27  ;;  %vm1732_vm5 = vmor %vm1730_vm4, %vm1731_vm3 }
 0x296   : > { %v1909_v61 = vpop.permute.xlu0 %1908  ;;  %v3914_v10 = vsel %vm1660_vm14, %v1662_v7, %v1658_v57  ;;  %vm1700_vm8 = vweird.f32 %v3903_v13 }
 0x297   : > { %v1951_v17 = vmul.f32 %v1909_v61, %v3872_v33  ;;  %v1669_v22 = vadd.f32 %v2827_v35, %v1668_v54  ;;  %vm1675_vm2 = vcmp.eq.f32.partialorder %v1674_v30, 8.507059e+37  ;;  %v1706_v54 = vand.u32 2147483648, %v3903_v13 }
 0x298   : > { %v2833_v61 = vpop.eup %2832 }
 0x299   : > { %1988 = vrot.lane.b32.xlu1 %v1951_v17, %s2887_s25  ;;  %v1726_v17 = vmul.f32 %v2831_v19, %v3890_v55  ;;  %v3916_v45 = vadd.f32 1.0, %v2833_v61  ;;  %v1673_v2 = vsel %vm1672_vm1, %v2827_v35, %v1669_v22  ;;  %v1734_v35 = vand.u32 2147483647, %v3890_v55 }
 0x29a   : > { %v2835_v39 = vpop.eup %2834  ;;  %v3926_v31 = vsel %vm1675_vm2, %v1677_v15, %v1673_v2  ;;  %v1707_v22 = vor.u32 1.1754944e-38, %v1706_v54 }
 0x29b   : > { %v1727_v59 = vsub.f32 1.0, %v1726_v17  ;;  %2836 = vrcp.f32 %v3916_v45  ;;  %v1696_v58 = vmul.f32 %v2835_v39, %v3903_v13  ;;  %vm1735_vm6 = vcmp.eq.f32.partialorder %v1734_v35, 8.507059e+37 }
 0x29c   : > { %vm1701_vm7 = vweird.f32 %v2835_v39  ;;  %v1704_v17 = vand.u32 2147483647, %v3903_v13  ;;  %v1721_v13 = vand.u32 2147483648, %v3916_v45  ;;  %vm1715_vm12 = vweird.f32 %v3916_v45 }
 0x29d   : > { %v1697_v6 = vsub.f32 1.0, %v1696_v58  ;;  %vm1702_vm9 = vmor %vm1700_vm8, %vm1701_vm7  ;;  %v1719_v58 = vand.u32 2147483647, %v3916_v45  ;;  %vm2202_vm7 = vcmask 261120   ;;  %vm2219_vm8 = vcmask 523264  }
 0x29e   : > { %v1911_v9 = vpop.permute.xlu1 %1910  ;;  %vm1705_vm10 = vcmp.eq.f32.partialorder %v1704_v17, 8.507059e+37  ;;  %v1722_v15 = vor.u32 1.1754944e-38, %v1721_v13  ;;  %v1869_v13 = vmul.f32 %v3682_v8, %v3846_v26 }
 0x29f   : > { %v1952_v62 = vmul.f32 %v1911_v9, %v3888_v60  ;;  %v2643_v9 = vmul.f32 -1.442695, %v3674_v40  ;;  %vm1720_vm14 = vcmp.eq.f32.partialorder %v1719_v58, 8.507059e+37 }
 0x2a1   : > { %1990 = vrot.lane.b32.xlu2 %v1952_v62, %s2887_s25  ;;  %v1728_v62 = vmul.f32 %v2831_v19, %v1727_v59  ;;  %2838 = vpow2.f32 %v2643_v9  ;;  %v2837_v52 = vpop.eup %2836 }
 0x2a2   : > { %v1711_v4 = vmul.f32 %v2837_v52, %v3916_v45  ;;  %2840 = vpow2.f32 %v2644_v21  ;;  %vm1716_vm11 = vweird.f32 %v2837_v52 }
 0x2a3   : > { %v1729_v56 = vadd.f32 %v2831_v19, %v1728_v62  ;;  %vm1717_vm13 = vmor %vm1715_vm12, %vm1716_vm11 }
 0x2a4   : > { %v1712_v57 = vsub.f32 1.0, %v1711_v4 }
 0x2a5   : > { %v1733_v49 = vsel %vm1732_vm5, %v2831_v19, %v1729_v56 }
 0x2a6   : > { %v1919_v48 = vpop.permute.xlu2 %1918 }
 0x2a7   : > { %v1956_v20 = vmul.f32 %v1919_v48, %v3905_v47  ;;  %v2839_v16 = vpop.eup %2838  ;;  %v1698_v48 = vmul.f32 %v2835_v39, %v1697_v6 }
 0x2a8   : > { %v1528_v14 = vadd.f32 1.0, %v2839_v16  ;;  %v2841_v19 = vpop.eup %2840 }
 0x2a9   : > { %1998 = vrot.lane.b32.xlu0 %v1956_v20, %s2887_s25  ;;  %v1737_v20 = vor.u32 1.1754944e-38, %v1736_v29  ;;  %v1699_v27 = vadd.f32 %v2835_v39, %v1698_v48 }
 0x2aa   : > { %2842 = vrcp.f32 %v1528_v14  ;;  %v1751_v48 = vand.u32 2147483648, %v1528_v14  ;;  %vm1745_vm0 = vweird.f32 %v1528_v14  ;;  %v1749_v4 = vand.u32 2147483647, %v1528_v14 }
 0x2ab   : > { %v3935_v25 = vsel %vm1735_vm6, %v1737_v20, %v1733_v49  ;;  %v1703_v7 = vsel %vm1702_vm9, %v2835_v39, %v1699_v27 }
 0x2ac   : > { %v3942_v59 = vsel %vm1705_vm10, %v1707_v22, %v1703_v7  ;;  %v1752_v20 = vor.u32 1.1754944e-38, %v1751_v48  ;;  %vm1750_vm2 = vcmp.eq.f32.partialorder %v1749_v4, 8.507059e+37  ;;  %v1873_v48 = vmul.f32 %v3710_v28, %v3851_v43 }
 0x2ad   : > { %v1875_v28 = vmul.f32 %v3720_v24, %v3926_v31  ;;  %v1874_v24 = vmul.f32 %v3639_v32, %v3914_v10  ;;  %v1879_v32 = vmul.f32 %v3760_v1, %v3935_v25 }
 0x2ae   : > { %v1915_v0 = vpop.permute.xlu0 %1914 }
 0x2af   : > { %v1954_v53 = vmul.f32 %v1915_v0, %v3914_v10  ;;  %v1713_v0 = vmul.f32 %v2837_v52, %v1712_v57 }
 0x2b0   : > { %v2843_v2 = vpop.eup %2842 }
 0x2b1   : > { %1994 = vrot.lane.b32.xlu1 %v1954_v53, %s2887_s25  ;;  %v1529_v53 = vadd.f32 1.0, %v2841_v19  ;;  %v1714_v30 = vadd.f32 %v2837_v52, %v1713_v0  ;;  %v1741_v39 = vmul.f32 %v2843_v2, %v1528_v14  ;;  %vm1746_vm15 = vweird.f32 %v2843_v2 }
 0x2b2   : > { %vm1747_vm1 = vmor %vm1745_vm0, %vm1746_vm15  ;;  %v1866_v14 = vmul.f32 %v3648_v12, %v3801_v23 }
 0x2b3   : > { %2844 = vrcp.f32 %v1529_v53  ;;  %v1718_v62 = vsel %vm1717_vm13, %v2837_v52, %v1714_v30  ;;  %v1742_v56 = vsub.f32 1.0, %v1741_v39  ;;  %v1766_v54 = vand.u32 2147483648, %v1529_v53 }
 0x2b4   : > { %vm1760_vm4 = vweird.f32 %v1529_v53  ;;  %v1764_v17 = vand.u32 2147483647, %v1529_v53 }
 0x2b5   : > { %v1743_v21 = vmul.f32 %v2843_v2, %v1742_v56  ;;  %v1767_v0 = vor.u32 1.1754944e-38, %v1766_v54 }
 0x2b6   : > { %v1917_v18 = vpop.permute.xlu1 %1916  ;;  %vm1765_vm6 = vcmp.eq.f32.partialorder %v1764_v17, 8.507059e+37 }
 0x2b7   : > { %v1955_v40 = vmul.f32 %v1917_v18, %v3926_v31  ;;  %v3949_v18 = vsel %vm1720_vm14, %v1722_v15, %v1718_v62  ;;  %v1744_v45 = vadd.f32 %v2843_v2, %v1743_v21  ;;  %v1870_v62 = vmul.f32 %v3621_v50, %v3744_v38 }
 0x2b8   : > { %v1872_v50 = vmul.f32 %v3690_v37, %v3888_v60 }
 0x2b9   : > { %1996 = vrot.lane.b32.xlu2 %v1955_v40, %s2887_s25  ;;  %v2845_v29 = vpop.eup %2844  ;;  %v1748_v52 = vsel %vm1747_vm1, %v2843_v2, %v1744_v45 }
 0x2ba   : > { %v1756_v35 = vmul.f32 %v2845_v29, %v1529_v53  ;;  %vm1761_vm3 = vweird.f32 %v2845_v29 }
 0x2bb   : > { %vm1762_vm5 = vmor %vm1760_vm4, %vm1761_vm3 }
 0x2bc   : > { %v1757_v16 = vsub.f32 1.0, %v1756_v35  ;;  %v1868_v35 = vmul.f32 %v3661_v42, %v3827_v63  ;;  %v1871_v42 = vmul.f32 %v3630_v3, %v3872_v33  ;;  %v1876_v3 = vmul.f32 %v3738_v44, %v3905_v47 }
 0x2bd   : > { %v1878_v44 = vmul.f32 %v3747_v51, %v3949_v18  ;;  %v1877_v51 = vmul.f32 %v3658_v46, %v3942_v59 }
 0x2be   : > { %v1925_v61 = vpop.permute.xlu2 %1924  ;;  %v1758_v49 = vmul.f32 %v2845_v29, %v1757_v16 }
 0x2bf   : > { %v1959_v55 = vmul.f32 %v1925_v61, %v3935_v25  ;;  %v3953_v61 = vsel %vm1750_vm2, %v1752_v20, %v1748_v52 }
 0x2c0   : > { %v1759_v57 = vadd.f32 %v2845_v29, %v1758_v49 }
 0x2c1   : > { %2004 = vrot.lane.b32.xlu0 %v1959_v55, %s2887_s25 }
 0x2c2   : > { %v1763_v19 = vsel %vm1762_vm5, %v2845_v29, %v1759_v57 }
 0x2c3   : > { %v3963_v30 = vsel %vm1765_vm6, %v1767_v0, %v1763_v19 }
 0x2c4   : > { %v1881_v1 = vmul.f32 %v3771_v34, %v3963_v30 }
 0x2c6   : > { %v1921_v36 = vpop.permute.xlu0 %1920 }
 0x2c7   : > { %v1957_v9 = vmul.f32 %v1921_v36, %v3942_v59  ;;  %v1867_v36 = vmul.f32 %v3669_v11, %v3718_v41 }
 0x2c9   : > { %2000 = vrot.lane.b32.xlu1 %v1957_v9, %s2887_s25 }
 0x2ce   : > { %v1923_v6 = vpop.permute.xlu1 %1922 }
 0x2cf   : > { %v1958_v40 = vmul.f32 %v1923_v6, %v3949_v18 }
 0x2d1   : > { %2002 = vrot.lane.b32.xlu2 %v1958_v40, %s2887_s25 }
 0x2de   : > { %v1927_v27 = vpop.permute.xlu0 %1926 }
 0x2df   : > { %v1960_v55 = vmul.f32 %v1927_v27, %v3953_v61 }
 0x2e1   : > { %2006 = vrot.lane.b32.xlu1 %v1960_v55, %s2887_s25 }
 0x2e3   : > { %v1979_v7 = vpop.permute.xlu2 %1978 }
 0x2e4   : > { %v3959_v22 = vadd.f32 %v1979_v7, %v1866_v14 }
 0x2e6   : > { %2846 = vtanh.f32 %v3959_v22  ;;  %v1981_v53 = vpop.permute.xlu0 %1980  ;;  %v1929_v9 = vpop.permute.xlu1 %1928 }
 0x2e7   : > { %v3966_v2 = vadd.f32 %v1981_v53, %v1867_v36  ;;  %v1961_v12 = vmul.f32 %v1929_v9, %v3963_v30 }
 0x2e9   : > { %2848 = vtanh.f32 %v3966_v2  ;;  %2008 = vrot.lane.b32.xlu2 %v1961_v12, %s2887_s25 }
 0x2eb   : > { %v1985_v58 = vpop.permute.xlu2 %1984 }
 0x2ec   : > { %v2847_v11 = vpop.eup %2846  ;;  %v3973_v39 = vadd.f32 %v1985_v58, %v1869_v13 }
 0x2ed   : > { %2074 = vrot.lane.b32.xlu0 %v2847_v11, %s2887_s25 }
 0x2ee   : > { %2850 = vtanh.f32 %v3973_v39  ;;  %v1987_v15 = vpop.permute.xlu0 %1986 }
 0x2ef   : > { %v2849_v6 = vpop.eup %2848  ;;  %v3979_v56 = vadd.f32 %v1987_v15, %v1870_v62 }
 0x2f0   : > { %2076 = vrot.lane.b32.xlu1 %v2849_v6, %s2887_s25 }
 0x2f1   : > { %2852 = vtanh.f32 %v3979_v56 }
 0x2f4   : > { %v2851_v8 = vpop.eup %2850 }
 0x2f5   : > { %2080 = vrot.lane.b32.xlu0 %v2851_v8, %s2887_s25 }
 0x2f7   : > { %v2853_v40 = vpop.eup %2852 }
 0x2f8   : > { %2082 = vrot.lane.b32.xlu1 %v2853_v40, %s2887_s25 }
 0x2fb   : > { %v1991_v29 = vpop.permute.xlu2 %1990 }
 0x2fc   : > { %v3987_v21 = vadd.f32 %v1991_v29, %v1872_v50 }
 0x2fd   : > { %v1983_v45 = vpop.permute.xlu1 %1982 }
 0x2fe   : > { %2854 = vtanh.f32 %v3987_v21  ;;  %v3992_v16 = vadd.f32 %v1983_v45, %v1868_v35  ;;  %v1880_v35 = vmul.f32 %v3678_v5, %v3953_v61 }
 0x300   : > { %2856 = vtanh.f32 %v3992_v16 }
 0x303   : > { %v1993_v4 = vpop.permute.xlu0 %1992 }
 0x304   : > { %v2855_v52 = vpop.eup %2854  ;;  %v3997_v49 = vadd.f32 %v1993_v4, %v1873_v48 }
 0x305   : > { %2086 = vrot.lane.b32.xlu0 %v2855_v52, %s2887_s25 }
 0x306   : > { %2858 = vtanh.f32 %v3997_v49  ;;  %v2857_v37 = vpop.eup %2856 }
 0x307   : > { %2078 = vrot.lane.b32.xlu2 %v2857_v37, %s2887_s25 }
 0x30b   : > { %v1989_v20 = vpop.permute.xlu1 %1988 }
 0x30c   : > { %v2859_v27 = vpop.eup %2858  ;;  %v4004_v57 = vadd.f32 %v1989_v20, %v1871_v42 }
 0x30d   : > { %2088 = vrot.lane.b32.xlu1 %v2859_v27, %s2887_s25 }
 0x30e   : > { %2860 = vtanh.f32 %v4004_v57 }
 0x313   : > { %v1997_v55 = vpop.permute.xlu2 %1996 }
 0x314   : > { %v2861_v54 = vpop.eup %2860  ;;  %v4010_v17 = vadd.f32 %v1997_v55, %v1875_v28 }
 0x315   : > { %2084 = vrot.lane.b32.xlu2 %v2861_v54, %s2887_s25 }
 0x316   : > { %2862 = vtanh.f32 %v4010_v17 }
 0x31b   : > { %v1999_v14 = vpop.permute.xlu0 %1998 }
 0x31c   : > { %v2863_v19 = vpop.eup %2862  ;;  %v4016_v7 = vadd.f32 %v1999_v14, %v1876_v3 }
 0x31d   : > { %2092 = vrot.lane.b32.xlu0 %v2863_v19, %s2887_s25 }
 0x31e   : > { %2864 = vtanh.f32 %v4016_v7 }
 0x323   : > { %v1995_v0 = vpop.permute.xlu1 %1994 }
 0x324   : > { %v2865_v36 = vpop.eup %2864  ;;  %v4022_v53 = vadd.f32 %v1995_v0, %v1874_v24 }
 0x325   : > { %2094 = vrot.lane.b32.xlu1 %v2865_v36, %s2887_s25 }
 0x326   : > { %2866 = vtanh.f32 %v4022_v53 }
 0x32b   : > { %v2003_v9 = vpop.permute.xlu2 %2002 }
 0x32c   : > { %v2867_v12 = vpop.eup %2866  ;;  %v4028_v13 = vadd.f32 %v2003_v9, %v1878_v44 }
 0x32d   : > { %2090 = vrot.lane.b32.xlu2 %v2867_v12, %s2887_s25 }
 0x32e   : > { %2868 = vtanh.f32 %v4028_v13 }
 0x333   : > { %v2005_v58 = vpop.permute.xlu0 %2004 }
 0x334   : > { %v2869_v11 = vpop.eup %2868  ;;  %v4034_v62 = vadd.f32 %v2005_v58, %v1879_v32 }
 0x335   : > { %2098 = vrot.lane.b32.xlu0 %v2869_v11, %s2887_s25 }
 0x336   : > { %2870 = vtanh.f32 %v4034_v62 }
 0x33b   : > { %v2001_v15 = vpop.permute.xlu1 %2000 }
 0x33c   : > { %v2871_v6 = vpop.eup %2870  ;;  %v4040_v8 = vadd.f32 %v2001_v15, %v1877_v51 }
 0x33d   : > { %2100 = vrot.lane.b32.xlu1 %v2871_v6, %s2887_s25 }
 0x33e   : > { %2872 = vtanh.f32 %v4040_v8 }
 0x343   : > { %v2009_v40 = vpop.permute.xlu2 %2008 }
 0x344   : > { %v2873_v50 = vpop.eup %2872  ;;  %v4046_v29 = vadd.f32 %v2009_v40, %v1881_v1 }
 0x345   : > { %2096 = vrot.lane.b32.xlu2 %v2873_v50, %s2887_s25 }
 0x346   : > { %2874 = vtanh.f32 %v4046_v29 }
 0x34c   : > { %v2875_v46 = vpop.eup %2874 }
 0x34d   : > { %2104 = vrot.lane.b32.xlu0 %v2875_v46, %s2887_s25 }
 0x353   : > { %v2007_v45 = vpop.permute.xlu1 %2006 }
 0x354   : > { %v4053_v48 = vadd.f32 %v2007_v45, %v1880_v35 }
 0x356   : > { %2876 = vtanh.f32 %v4053_v48 }
 0x35c   : > { %v2877_v34 = vpop.eup %2876 }
 0x35d   : > { %2102 = vrot.lane.b32.xlu2 %v2877_v34, %s2887_s25 }
 0x35f   : > { %v2075_v4 = vpop.permute.xlu0 %2074 }
 0x360   : > { %v2122_v52 = vmul.f32 %v2075_v4, %v3801_v23 }
 0x361   : > { %v2079_v20 = vpop.permute.xlu2 %2078 }
 0x362   : > { %v2077_v37 = vpop.permute.xlu1 %2076  ;;  %2154 = vrot.lane.b32.xlu1 %v2122_v52, %s2888_s12  ;;  %v2124_v5 = vmul.f32 %v2079_v20, %v3827_v63 }
 0x363   : > { %v2123_v42 = vmul.f32 %v2077_v37, %v3718_v41 }
 0x364   : > { %2158 = vrot.lane.b32.xlu0 %v2124_v5, %s2888_s12 }
 0x365   : > { %2156 = vrot.lane.b32.xlu2 %v2123_v42, %s2888_s12 }
 0x367   : > { %v2081_v27 = vpop.permute.xlu0 %2080 }
 0x368   : > { %v2125_v28 = vmul.f32 %v2081_v27, %v3846_v26 }
 0x36a   : > { %v2083_v55 = vpop.permute.xlu1 %2082  ;;  %2160 = vrot.lane.b32.xlu1 %v2125_v28, %s2888_s12 }
 0x36b   : > { %v2126_v23 = vmul.f32 %v2083_v55, %v3744_v38 }
 0x36d   : > { %2162 = vrot.lane.b32.xlu2 %v2126_v23, %s2888_s12 }
 0x36f   : > { %v2085_v54 = vpop.permute.xlu2 %2084 }
 0x370   : > { %v2127_v41 = vmul.f32 %v2085_v54, %v3872_v33 }
 0x372   : > { %2164 = vrot.lane.b32.xlu0 %v2127_v41, %s2888_s12 }
 0x377   : > { %v2087_v63 = vpop.permute.xlu0 %2086 }
 0x378   : > { %v2128_v3 = vmul.f32 %v2087_v63, %v3888_v60 }
 0x37a   : > { %2166 = vrot.lane.b32.xlu1 %v2128_v3, %s2888_s12 }
 0x37f   : > { %v2089_v14 = vpop.permute.xlu1 %2088 }
 0x380   : > { %v2129_v26 = vmul.f32 %v2089_v14, %v3851_v43 }
 0x382   : > { %2168 = vrot.lane.b32.xlu2 %v2129_v26, %s2888_s12 }
 0x387   : > { %v2091_v19 = vpop.permute.xlu2 %2090 }
 0x388   : > { %v2130_v38 = vmul.f32 %v2091_v19, %v3914_v10 }
 0x38a   : > { %2170 = vrot.lane.b32.xlu0 %v2130_v38, %s2888_s12 }
 0x38f   : > { %v2093_v24 = vpop.permute.xlu0 %2092 }
 0x390   : > { %v2131_v33 = vmul.f32 %v2093_v24, %v3926_v31 }
 0x392   : > { %2172 = vrot.lane.b32.xlu1 %v2131_v33, %s2888_s12 }
 0x397   : > { %v2095_v0 = vpop.permute.xlu1 %2094 }
 0x398   : > { %v2132_v60 = vmul.f32 %v2095_v0, %v3905_v47 }
 0x39a   : > { %2174 = vrot.lane.b32.xlu2 %v2132_v60, %s2888_s12 }
 0x39f   : > { %v2097_v36 = vpop.permute.xlu2 %2096 }
 0x3a0   : > { %v2133_v43 = vmul.f32 %v2097_v36, %v3942_v59 }
 0x3a2   : > { %2176 = vrot.lane.b32.xlu0 %v2133_v43, %s2888_s12 }
 0x3a7   : > { %v2099_v44 = vpop.permute.xlu0 %2098 }
 0x3a8   : > { %v2134_v10 = vmul.f32 %v2099_v44, %v3949_v18 }
 0x3aa   : > { %2178 = vrot.lane.b32.xlu1 %v2134_v10, %s2888_s12 }
 0x3af   : > { %v2101_v9 = vpop.permute.xlu1 %2100 }
 0x3b0   : > { %v2135_v31 = vmul.f32 %v2101_v9, %v3935_v25 }
 0x3b2   : > { %2180 = vrot.lane.b32.xlu2 %v2135_v31, %s2888_s12 }
 0x3b7   : > { %v2103_v12 = vpop.permute.xlu2 %2102 }
 0x3b8   : > { %v2136_v47 = vmul.f32 %v2103_v12, %v3953_v61 }
 0x3ba   : > { %2182 = vrot.lane.b32.xlu0 %v2136_v47, %s2888_s12 }
 0x3bf   : > { %v2157_v59 = vpop.permute.xlu2 %2156  ;;  %v2105_v25 = vpop.permute.xlu0 %2104 }
 0x3c0   : > { %v2204_v18 = vsel %vm2202_vm7, %v2157_v59, %v3966_v2  ;;  %v2137_v61 = vmul.f32 %v2105_v25, %v3963_v30 }
 0x3c1   : > { %2221 = vst.msk [vmem:[%s4091_s28 + $0x8] sm:$0xff] %vm2219_vm8, %v2204_v18 }
 0x3c2   : > { %2184 = vrot.lane.b32.xlu1 %v2137_v61, %s2888_s12 }
 0x3c7   : > { %v2163_v32 = vpop.permute.xlu2 %2162 }
 0x3c8   : > { %v2207_v58 = vsel %vm2202_vm7, %v2163_v32, %v3979_v56 }
 0x3c9   : > { %2224 = vst.msk [vmem:[%s4091_s28 + $0x20] sm:$0xff] %vm2219_vm8, %v2207_v58 }
 0x3d4   : > { %v2155_v11 = vpop.permute.xlu1 %2154 }
 0x3d5   : > { %v2203_v51 = vsel %vm2202_vm7, %v2155_v11, %v3959_v22 }
 0x3d6   : > { %2220 = vst.msk [vmem:[%s4091_s28] sm:$0xff] %vm2219_vm8, %v2203_v51  ;;  %v2159_v30 = vpop.permute.xlu0 %2158 }
 0x3d7   : > { %v2205_v2 = vsel %vm2202_vm7, %v2159_v30, %v3992_v16 }
 0x3d8   : > { %2222 = vst.msk [vmem:[%s4091_s28 + $0x10] sm:$0xff] %vm2219_vm8, %v2205_v2 }
 0x3dc   : > { %v2169_v15 = vpop.permute.xlu2 %2168  ;;  %v2161_v6 = vpop.permute.xlu1 %2160 }
 0x3dd   : > { %v2210_v56 = vsel %vm2202_vm7, %v2169_v15, %v3997_v49  ;;  %v2206_v1 = vsel %vm2202_vm7, %v2161_v6, %v3973_v39 }
 0x3de   : > { %2227 = vst.msk [vmem:[%s4091_s28 + $0x38] sm:$0xff] %vm2219_vm8, %v2210_v56 }
 0x3df   : > { %2223 = vst.msk [vmem:[%s4091_s28 + $0x18] sm:$0xff] %vm2219_vm8, %v2206_v1 }
 0x3e4   : > { %v2165_v22 = vpop.permute.xlu0 %2164 }
 0x3e5   : > { %v2208_v16 = vsel %vm2202_vm7, %v2165_v22, %v4004_v57 }
 0x3e6   : > { %2225 = vst.msk [vmem:[%s4091_s28 + $0x28] sm:$0xff] %vm2219_vm8, %v2208_v16 }
 0x3ec   : > { %v2167_v40 = vpop.permute.xlu1 %2166 }
 0x3ed   : > { %v2209_v50 = vsel %vm2202_vm7, %v2167_v40, %v3987_v21 }
 0x3ee   : > { %2226 = vst.msk [vmem:[%s4091_s28 + $0x30] sm:$0xff] %vm2219_vm8, %v2209_v50 }
 0x3f4   : > { %v2175_v39 = vpop.permute.xlu2 %2174 }
 0x3f5   : > { %v2213_v49 = vsel %vm2202_vm7, %v2175_v39, %v4016_v7 }
 0x3f6   : > { %2230 = vst.msk [vmem:[%s4091_s28 + $0x50] sm:$0xff] %vm2219_vm8, %v2213_v49 }
 0x3fc   : > { %v2171_v46 = vpop.permute.xlu0 %2170 }
 0x3fd   : > { %v2211_v57 = vsel %vm2202_vm7, %v2171_v46, %v4022_v53 }
 0x3fe   : > { %2228 = vst.msk [vmem:[%s4091_s28 + $0x40] sm:$0xff] %vm2219_vm8, %v2211_v57 }
 0x404   : > { %v2173_v35 = vpop.permute.xlu1 %2172 }
 0x405   : > { %v2212_v21 = vsel %vm2202_vm7, %v2173_v35, %v4010_v17 }
 0x406   : > { %2229 = vst.msk [vmem:[%s4091_s28 + $0x48] sm:$0xff] %vm2219_vm8, %v2212_v21 }
 0x40c   : > { %v2181_v45 = vpop.permute.xlu2 %2180 }
 0x40d   : > { %v2216_v7 = vsel %vm2202_vm7, %v2181_v45, %v4034_v62 }
 0x40e   : > { %2233 = vst.msk [vmem:[%s4091_s28 + $0x68] sm:$0xff] %vm2219_vm8, %v2216_v7 }
 0x414   : > { %v2177_v34 = vpop.permute.xlu0 %2176 }
 0x415   : > { %v2214_v53 = vsel %vm2202_vm7, %v2177_v34, %v4040_v8 }
 0x416   : > { %2231 = vst.msk [vmem:[%s4091_s28 + $0x58] sm:$0xff] %vm2219_vm8, %v2214_v53 }
 0x41c   : > { %v2179_v4 = vpop.permute.xlu1 %2178 }
 0x41d   : > { %v2215_v52 = vsel %vm2202_vm7, %v2179_v4, %v4028_v13 }
 0x41e   : > { %2232 = vst.msk [vmem:[%s4091_s28 + $0x60] sm:$0xff] %vm2219_vm8, %v2215_v52 }
 0x42c   : > { %v2183_v17 = vpop.permute.xlu0 %2182 }
 0x42d   : > { %v2217_v37 = vsel %vm2202_vm7, %v2183_v17, %v4053_v48 }
 0x42e   : > { %2234 = vst.msk [vmem:[%s4091_s28 + $0x70] sm:$0xff] %vm2219_vm8, %v2217_v37 }
 0x434   : > { %v2185_v62 = vpop.permute.xlu1 %2184 }
 0x435   : > { %v2218_v42 = vsel %vm2202_vm7, %v2185_v62, %v4046_v29 }
 0x436   : > { %2235 = vst.msk [vmem:[%s4091_s28 + $0x78] sm:$0xff] %vm2219_vm8, %v2218_v42 }
 0x437 PF: > { %s20_s13 = sadd.s32 1, %s2884_s13  }
 0x438   : > { %p17_p4 = scmp.ge.s32.totalorder %s20_s13, 4  }
 0x43a   :  { %19 = sbr.rel (!%p17_p4) target bundleno = 1 (0x1), region = 96 }

</bundles_post_ra>
